<compile_context>
chip_gen: v7x
topology: tpu7x:2x2x1
jax: 0.10.0
libtpu: 0.0.40
codegen_flags: <defaults>
</compile_context>

<pallas_src>
import functools

import jax
import jax.numpy as jnp
from jax import lax
from jax.experimental import pallas as pl
from jax.experimental.pallas import tpu as pltpu

import numpy as np


# ---------------------------------------------------------------------------
# Pallas kernel (fully fused forward)
# ---------------------------------------------------------------------------
def _block_compute(x, adj_ref, gw_ref, cwp_ref, gcn_b, conv_b, gamma, beta,
                   t_iota):
    """One STGNNBlock on an in-register activation.

    x       : (B, N, T, C) f32 value (channels on the lane axis)
    adj_ref : (N, N) ref
    gw_ref  : (C, Fp) gcn weight ref (bf16 when it feeds the MXU)
    cwp_ref : (Fp, K*Fp) packed temporal-conv weight ref (bf16):
              cwp[c, k*Fp + o] = w[k, c, o], zero in padded rows/cols
    gcn_b, conv_b, gamma, beta : (1, Fp) f32 values
    t_iota  : (B*N, T, Fp) int32 iota along T (hoisted, shared by both blocks)
    returns : (B, N, T, Fp) f32 value
    """
    B, N, T, C = x.shape
    Fp = gw_ref.shape[1]
    K = cwp_ref.shape[1] // Fp
    pad = K // 2
    M = B * N * T

    # ---- GraphConvolution: support = x @ W ; g = adj @ support + b ----
    if C == 1:
        support = x * gw_ref[...].astype(jnp.float32).reshape(1, 1, 1, Fp)
    else:
        support = jnp.dot(x.reshape(M, C).astype(jnp.bfloat16), gw_ref[...],
                          preferred_element_type=jnp.float32).reshape(B, N, T, Fp)
    if N == 1:
        g = support * adj_ref[0, 0]
    else:
        # TODO(synk): for real node counts restructure so the node contraction
        # lands on the lane axis (this path relayouts in-kernel).
        g = jnp.einsum('mn,bntf->bmtf', adj_ref[...], support,
                       preferred_element_type=jnp.float32)
    g = g + gcn_b.reshape(1, 1, 1, Fp)

    # ---- temporal conv (kernel (K,1), zero pad (K//2, 0)):
    #      ONE wide bf16 MXU dot, then per-tap XLU roll + masked add ----
    wide = jnp.dot(g.reshape(M, Fp).astype(jnp.bfloat16), cwp_ref[...],
                   preferred_element_type=jnp.float32)        # (M, K*Fp) f32
    wide = wide.reshape(B * N, T, K * Fp)                     # free: splits rows only

    # centre tap initialises the accumulator (adds the conv bias exactly once)
    acc = wide[:, :, pad * Fp:(pad + 1) * Fp] + conv_b.reshape(1, 1, Fp)
    for k in range(K):                                        # static unroll, K small
        off = k - pad                                         # out[t] += chunk[t+off]
        if off == 0:
            continue
        chunk = wide[:, :, k * Fp:(k + 1) * Fp]               # 128-lane aligned slice
        rolled = pltpu.roll(chunk, shift=(-off) % T, axis=1)  # XLU sublane rotate
        mask = (t_iota >= -off) & (t_iota < T - off)          # zero-pad boundary
        acc = acc + jnp.where(mask, rolled, 0.0)

    # ---- BatchNorm2d (training-mode batch stats) folded to scale/shift + ReLU ----
    mean = jnp.mean(acc, axis=(0, 1), keepdims=True)              # (1, 1, Fp)
    var = jnp.mean((acc - mean) ** 2, axis=(0, 1), keepdims=True)  # biased variance
    scale = gamma.reshape(1, 1, Fp) * lax.rsqrt(var + 1e-5)       # rsqrt -> EUP
    shift = beta.reshape(1, 1, Fp) - mean * scale
    return jnp.maximum(acc * scale + shift, 0.0).reshape(B, N, T, Fp)


def stgnn_fused_kernel(x_ref, adj_ref, gw1_ref, cw1_ref, gw2_ref, cw2_ref,
                       vecs_ref, fcw_ref, fcb_ref, out_ref):
    """Full STGNN forward: block1 -> block2 -> FC head. Single store."""
    x = x_ref[...].astype(jnp.float32)            # (B, N, T, C)
    B, N, T, _ = x.shape
    Fp = gw1_ref.shape[1]
    OUT = out_ref.shape[1]

    vecs = vecs_ref[...]                          # (8, Fp): packed per-channel vectors
    t_iota = lax.broadcasted_iota(jnp.int32, (B * N, T, Fp), 1)   # hoisted once

    h1 = _block_compute(x, adj_ref, gw1_ref, cw1_ref,
                        vecs[0:1], vecs[1:2], vecs[2:3], vecs[3:4], t_iota)
    h2 = _block_compute(h1, adj_ref, gw2_ref, cw2_ref,
                        vecs[4:5], vecs[5:6], vecs[6:7], vecs[7:8], t_iota)

    # ---- FC head without flattening h2 (no 128 -> N*T*Fp lane relayout):
    # fc_w is pre-permuted to (N, T, Fp, OUT); contract Fp per (n, t) and add.
    h2b = h2.astype(jnp.bfloat16)
    out = jnp.zeros((B, OUT), jnp.float32)
    for n in range(N):                            # static unroll (N*T is small)
        for t in range(T):
            out = out + jnp.dot(h2b[:, n, t, :], fcw_ref[n, t],
                                preferred_element_type=jnp.float32)
    out_ref[...] = out + fcb_ref[...]


# ---------------------------------------------------------------------------
# Wrappers (glue)
# ---------------------------------------------------------------------------
_VMEM = functools.partial(pl.BlockSpec, memory_space=pltpu.MemorySpace.VMEM)


def prepare_kernel_params(params, T, N, f_pad=128):
    """Pre-pack torch-layout params for the fused kernel (one-time, outside).

    * channel dim zero-padded to f_pad (=128): lane-dense vregs, aligned slices
    * temporal-conv weight packed (C, K*f_pad) for the single wide MXU dot
    * MXU-feeding weights stored bf16 (kernel accumulates in f32)
    * the eight tiny (1, F) per-channel vectors packed into one (8, f_pad) array
    * fc weight pre-permuted to (N, T, f_pad, OUT) so the kernel never flattens h2
    """
    F = params['block1']['conv_w'].shape[1]
    K = params['block1']['conv_w'].shape[0]
    OUT = params['fc_w'].shape[1]

    def pad_cols(a):                                         # (1, F) -> (1, f_pad)
        return jnp.pad(a, ((0, 0), (0, f_pad - a.shape[1])))

    def pack_conv(w):                        # (K, C_in, C_out) -> (f_pad, K*f_pad) bf16
        taps = [jnp.pad(w[k], ((0, f_pad - w.shape[1]), (0, f_pad - w.shape[2])))
                for k in range(K)]
        return jnp.concatenate(taps, axis=1).astype(jnp.bfloat16)

    gw1 = pad_cols(params['block1']['gcn_w'])    # (1, f_pad) f32 (C==1 path: no MXU)
    gw2 = jnp.pad(params['block2']['gcn_w'],
                  ((0, f_pad - F), (0, f_pad - F))).astype(jnp.bfloat16)

    vecs = jnp.concatenate(
        [pad_cols(params[b][k])
         for b in ('block1', 'block2')
         for k in ('gcn_b', 'conv_b', 'bn_gamma', 'bn_beta')], axis=0)  # (8, f_pad)

    # torch flattens from (B, F, T, N); re-index fc_w as [n, t, f, o] and pad F.
    fcw = jnp.transpose(params['fc_w'].reshape(F, T, N, OUT), (2, 1, 0, 3))
    fcw = jnp.pad(fcw, ((0, 0), (0, 0), (0, f_pad - F), (0, 0))).astype(jnp.bfloat16)

    return dict(gw1=gw1, cw1=pack_conv(params['block1']['conv_w']),
                gw2=gw2, cw2=pack_conv(params['block2']['conv_w']),
                vecs=vecs, fc_w=fcw, fc_b=params['fc_b'])


@jax.jit
def stgnn_forward(x_nchw, adj, kp):
    """x_nchw: (B, C=1, T, N) — same layout PyTorch's STGNN.forward expects."""
    B, C, T, N = x_nchw.shape
    Fp = kp['gw1'].shape[1]
    K = kp['cw1'].shape[1] // Fp
    OUT = kp['fc_b'].shape[1]
    xl = jnp.transpose(x_nchw, (0, 3, 2, 1))     # (B, N, T, C): channels on lanes

    M = B * N * T
    flops = (2 * M * C * Fp + 2 * M * Fp * K * Fp          # block1
             + 2 * M * Fp * Fp + 2 * M * Fp * K * Fp       # block2
             + 2 * M * Fp * OUT)                            # fc head
    args = (xl, adj, kp['gw1'], kp['cw1'], kp['gw2'], kp['cw2'],
            kp['vecs'], kp['fc_w'], kp['fc_b'])
    bytes_accessed = sum(a.size * a.dtype.itemsize for a in args) + B * OUT * 4

    # TODO(synk): at scaled B add a grid over B*N*T row tiles
    # (dimension_semantics=("parallel",)) for v7x's two TensorCores, make BN a
    # cross-tile two-pass reduction, and set vmem_limit_bytes for v5e.
    return pl.pallas_call(
        stgnn_fused_kernel,
        out_shape=jax.ShapeDtypeStruct((B, OUT), jnp.float32),
        in_specs=[_VMEM()] * len(args),
        out_specs=_VMEM(),
        cost_estimate=pl.CostEstimate(flops=flops, transcendentals=2 * Fp,
                                      bytes_accessed=bytes_accessed),
    )(*args)


# ---------------------------------------------------------------------------
# Pure-JAX reference (mirrors the PyTorch module, torch-layout params)
# ---------------------------------------------------------------------------
def _ref_block(x_nchw, adj, p):
    B, C, T, N = x_nchw.shape
    xp = jnp.transpose(x_nchw, (0, 2, 3, 1))                          # (B,T,N,C)
    support = jnp.einsum('btnc,cf->btnf', xp, p['gcn_w'])
    out = jnp.einsum('mn,btnf->btmf', adj, support) + p['gcn_b'].reshape(1, 1, 1, -1)
    h = jnp.transpose(out, (0, 3, 1, 2))                              # (B,F,T,N)
    K = p['conv_w'].shape[0]
    pad = K // 2
    hp = jnp.pad(h, ((0, 0), (0, 0), (pad, pad), (0, 0)))
    Fo = p['conv_w'].shape[2]
    y = jnp.zeros((B, Fo, T, N), jnp.float32) + p['conv_b'].reshape(1, -1, 1, 1)
    for k in range(K):
        y = y + jnp.einsum('bitn,io->botn', hp[:, :, k:k + T, :], p['conv_w'][k])
    mean = jnp.mean(y, axis=(0, 2, 3), keepdims=True)
    var = jnp.mean((y - mean) ** 2, axis=(0, 2, 3), keepdims=True)
    yn = (y - mean) * lax.rsqrt(var + 1e-5)
    yn = yn * p['bn_gamma'].reshape(1, -1, 1, 1) + p['bn_beta'].reshape(1, -1, 1, 1)
    return jnp.maximum(yn, 0.0)                                       # (B,F,T,N)


def _ref_forward(x, adj, params):
    h1 = _ref_block(x, adj, params['block1'])
    h2 = _ref_block(h1, adj, params['block2'])
    flat = h2.reshape(h2.shape[0], -1)
    return flat @ params['fc_w'] + params['fc_b']


# ---------------------------------------------------------------------------
# Deterministic parameter construction (torch layout / torch-like init)
# ---------------------------------------------------------------------------
def _uniform(key, shape, fan_in):
    bound = 1.0 / np.sqrt(max(fan_in, 1))
    return jax.random.uniform(key, shape, jnp.float32, -bound, bound)


def make_params(key, c_in1, hidden, K, T, N, out_features):
    ks = jax.random.split(key, 8)

    def block(kw, kb, kcw, kcb, c_in):
        return dict(
            gcn_w=_uniform(kw, (c_in, hidden), c_in),
            gcn_b=_uniform(kb, (1, hidden), c_in),
            conv_w=_uniform(kcw, (K, hidden, hidden), hidden * K),  # (k, c_in, c_out)
            conv_b=_uniform(kcb, (1, hidden), hidden * K),
            bn_gamma=jnp.ones((1, hidden), jnp.float32),
            bn_beta=jnp.zeros((1, hidden), jnp.float32),
        )

    fc_in = hidden * N * T
    return dict(
        block1=block(ks[0], ks[1], ks[2], ks[3], c_in1),
        block2=block(ks[4], ks[5], ks[6], ks[7], hidden),
        fc_w=_uniform(jax.random.fold_in(key, 100), (fc_in, out_features), fc_in),
        fc_b=_uniform(jax.random.fold_in(key, 101), (1, out_features), fc_in),
    )


# ---------------------------------------------------------------------------
if __name__ == "__main__":
    B = 2              # batch
    N = 1              # num_nodes (module hard-codes 1)
    T = 8              # time_steps (hp.input_max_len)
    OUT = 4            # out_features (hp.future_seq)
    HIDDEN, K = 64, 3

    key = jax.random.PRNGKey(0)
    kx, kp = jax.random.split(key)
    params = make_params(kp, 1, HIDDEN, K, T, N, OUT)
    kparams = prepare_kernel_params(params, T, N)

    x = jax.random.normal(kx, (B, 1, T, N), jnp.float32)   # NCHW: (B, C=1, T, N)
    adj = jnp.eye(N, dtype=jnp.float32)

    y = stgnn_forward(x, adj, kparams)
    y = jax.block_until_ready(y)
    assert y.shape == (B, OUT)

    y_ref = _ref_forward(x, adj, params)
    # tolerance widened vs the pure-f32 version: MXU operands are bf16
    # (accumulation, BN stats and biases stay f32).
    np.testing.assert_allclose(np.asarray(y), np.asarray(y_ref), rtol=1e-2, atol=1e-2)

    # TODO(synk): BatchNorm running_mean/running_var updates (training-time side
    # effects) are not materialized; only the normalized forward is reproduced.
    print("KERNEL_OK")
</pallas_src>

<mosaic_0001>
module attributes {stable_mosaic.version = 11 : i64} {
  func.func @stgnn_fused_kernel(%arg0: memref<2x1x8x1xf32, #tpu.memory_space<vmem>>, %arg1: memref<1x1xf32, #tpu.memory_space<vmem>>, %arg2: memref<1x128xf32, #tpu.memory_space<vmem>>, %arg3: memref<128x384xbf16, #tpu.memory_space<vmem>>, %arg4: memref<128x128xbf16, #tpu.memory_space<vmem>>, %arg5: memref<128x384xbf16, #tpu.memory_space<vmem>>, %arg6: memref<8x128xf32, #tpu.memory_space<vmem>>, %arg7: memref<1x8x128x4xbf16, #tpu.memory_space<vmem>>, %arg8: memref<1x4xf32, #tpu.memory_space<vmem>>, %arg9: memref<2x4xf32, #tpu.memory_space<vmem>>) attributes {dimension_semantics = [], scalar_prefetch = 0 : i64, scratch_operands = 0 : i64, tpu.core_type = #tpu.core_type<tc>} {
    %c0 = arith.constant 0 : index
    %c0_0 = arith.constant 0 : index
    %c0_1 = arith.constant 0 : index
    %c0_2 = arith.constant 0 : index
    %0 = vector.load %arg0[%c0, %c0_0, %c0_1, %c0_2] : memref<2x1x8x1xf32, #tpu.memory_space<vmem>>, vector<2x1x8x1xf32>
    %c0_3 = arith.constant 0 : index
    %c0_4 = arith.constant 0 : index
    %1 = vector.load %arg6[%c0_3, %c0_4] : memref<8x128xf32, #tpu.memory_space<vmem>>, vector<8x128xf32>
    %2 = tpu.iota {dimensions = array<i32: 1>} : vector<2x8x128xi32>
    %3 = vector.extract_strided_slice %1 {offsets = [0, 0], sizes = [1, 128], strides = [1, 1]} : vector<8x128xf32> to vector<1x128xf32>
    %4 = vector.extract_strided_slice %1 {offsets = [1, 0], sizes = [1, 128], strides = [1, 1]} : vector<8x128xf32> to vector<1x128xf32>
    %5 = vector.extract_strided_slice %1 {offsets = [2, 0], sizes = [1, 128], strides = [1, 1]} : vector<8x128xf32> to vector<1x128xf32>
    %6 = vector.extract_strided_slice %1 {offsets = [3, 0], sizes = [1, 128], strides = [1, 1]} : vector<8x128xf32> to vector<1x128xf32>
    %c0_5 = arith.constant 0 : index
    %c0_6 = arith.constant 0 : index
    %7 = vector.load %arg2[%c0_5, %c0_6] : memref<1x128xf32, #tpu.memory_space<vmem>>, vector<1x128xf32>
    %8 = vector.shape_cast %7 : vector<1x128xf32> to vector<1x1x1x128xf32>
    %9 = vector.broadcast %0 : vector<2x1x8x1xf32> to vector<2x1x8x128xf32>
    %10 = vector.broadcast %8 : vector<1x1x1x128xf32> to vector<2x1x8x128xf32>
    %11 = arith.mulf %9, %10 : vector<2x1x8x128xf32>
    %c0_7 = arith.constant 0 : index
    %c0_8 = arith.constant 0 : index
    %12 = vector.load %arg1[%c0_7, %c0_8] : memref<1x1xf32, #tpu.memory_space<vmem>>, vector<1x1xf32>
    %13 = vector.extract %12[0, 0] : f32 from vector<1x1xf32>
    %14 = vector.broadcast %13 : f32 to vector<2x1x8x128xf32>
    %15 = arith.mulf %11, %14 : vector<2x1x8x128xf32>
    %16 = vector.shape_cast %3 : vector<1x128xf32> to vector<1x1x1x128xf32>
    %17 = vector.broadcast %16 : vector<1x1x1x128xf32> to vector<2x1x8x128xf32>
    %18 = arith.addf %15, %17 : vector<2x1x8x128xf32>
    %19 = vector.shape_cast %18 : vector<2x1x8x128xf32> to vector<16x128xf32>
    %20 = arith.truncf %19 : vector<16x128xf32> to vector<16x128xbf16>
    %c0_9 = arith.constant 0 : index
    %c0_10 = arith.constant 0 : index
    %21 = vector.load %arg3[%c0_9, %c0_10] : memref<128x384xbf16, #tpu.memory_space<vmem>>, vector<128x384xbf16>
    %cst = arith.constant dense<0.000000e+00> : vector<16x384xf32>
    %22 = tpu.matmul %20, %21, %cst {dimension_numbers = #tpu.dot_dimension_numbers<[1], [0], [0], [1], [0, 0, 1, 1], [], []>} : vector<16x128xbf16>, vector<128x384xbf16>, vector<16x384xf32> -> vector<16x384xf32>
    %23 = vector.shape_cast %22 : vector<16x384xf32> to vector<2x8x384xf32>
    %24 = vector.extract_strided_slice %23 {offsets = [0, 0, 128], sizes = [2, 8, 128], strides = [1, 1, 1]} : vector<2x8x384xf32> to vector<2x8x128xf32>
    %25 = vector.shape_cast %4 : vector<1x128xf32> to vector<1x1x128xf32>
    %26 = vector.broadcast %25 : vector<1x1x128xf32> to vector<2x8x128xf32>
    %27 = arith.addf %24, %26 : vector<2x8x128xf32>
    %28 = vector.extract_strided_slice %23 {offsets = [0, 0, 0], sizes = [2, 8, 128], strides = [1, 1, 1]} : vector<2x8x384xf32> to vector<2x8x128xf32>
    %c1_i32 = arith.constant 1 : i32
    %29 = tpu.dynamic_rotate %28 by %c1_i32 dim 1 : vector<2x8x128xf32>, i32 -> vector<2x8x128xf32>
    %c1_i32_11 = arith.constant 1 : i32
    %30 = vector.broadcast %c1_i32_11 : i32 to vector<2x8x128xi32>
    %31 = arith.cmpi sge, %2, %30 : vector<2x8x128xi32>
    %c9_i32 = arith.constant 9 : i32
    %32 = vector.broadcast %c9_i32 : i32 to vector<2x8x128xi32>
    %33 = arith.cmpi slt, %2, %32 : vector<2x8x128xi32>
    %34 = arith.andi %31, %33 : vector<2x8x128xi1>
    %cst_12 = arith.constant 0.000000e+00 : f32
    %35 = vector.broadcast %cst_12 : f32 to vector<2x8x128xf32>
    %36 = arith.select %34, %29, %35 : vector<2x8x128xi1>, vector<2x8x128xf32>
    %37 = arith.addf %27, %36 : vector<2x8x128xf32>
    %38 = vector.extract_strided_slice %23 {offsets = [0, 0, 256], sizes = [2, 8, 128], strides = [1, 1, 1]} : vector<2x8x384xf32> to vector<2x8x128xf32>
    %c7_i32 = arith.constant 7 : i32
    %39 = tpu.dynamic_rotate %38 by %c7_i32 dim 1 : vector<2x8x128xf32>, i32 -> vector<2x8x128xf32>
    %c-1_i32 = arith.constant -1 : i32
    %40 = vector.broadcast %c-1_i32 : i32 to vector<2x8x128xi32>
    %41 = arith.cmpi sge, %2, %40 : vector<2x8x128xi32>
    %c7_i32_13 = arith.constant 7 : i32
    %42 = vector.broadcast %c7_i32_13 : i32 to vector<2x8x128xi32>
    %43 = arith.cmpi slt, %2, %42 : vector<2x8x128xi32>
    %44 = arith.andi %41, %43 : vector<2x8x128xi1>
    %cst_14 = arith.constant 0.000000e+00 : f32
    %45 = vector.broadcast %cst_14 : f32 to vector<2x8x128xf32>
    %46 = arith.select %44, %39, %45 : vector<2x8x128xi1>, vector<2x8x128xf32>
    %47 = arith.addf %37, %46 : vector<2x8x128xf32>
    %cst_15 = arith.constant dense<0.000000e+00> : vector<128xf32>
    %48 = vector.multi_reduction <add>, %47, %cst_15 [0, 1] : vector<2x8x128xf32> to vector<128xf32>
    %49 = vector.shape_cast %48 : vector<128xf32> to vector<1x1x128xf32>
    %cst_16 = arith.constant 1.600000e+01 : f32
    %50 = vector.broadcast %cst_16 : f32 to vector<1x1x128xf32>
    %51 = arith.divf %49, %50 : vector<1x1x128xf32>
    %52 = vector.broadcast %51 : vector<1x1x128xf32> to vector<2x8x128xf32>
    %53 = arith.subf %47, %52 : vector<2x8x128xf32>
    %54 = arith.mulf %53, %53 : vector<2x8x128xf32>
    %cst_17 = arith.constant dense<0.000000e+00> : vector<128xf32>
    %55 = vector.multi_reduction <add>, %54, %cst_17 [0, 1] : vector<2x8x128xf32> to vector<128xf32>
    %56 = vector.shape_cast %55 : vector<128xf32> to vector<1x1x128xf32>
    %cst_18 = arith.constant 1.600000e+01 : f32
    %57 = vector.broadcast %cst_18 : f32 to vector<1x1x128xf32>
    %58 = arith.divf %56, %57 : vector<1x1x128xf32>
    %59 = vector.shape_cast %5 : vector<1x128xf32> to vector<1x1x128xf32>
    %cst_19 = arith.constant 9.99999974E-6 : f32
    %60 = vector.broadcast %cst_19 : f32 to vector<1x1x128xf32>
    %61 = arith.addf %58, %60 : vector<1x1x128xf32>
    %62 = math.rsqrt %61 : vector<1x1x128xf32>
    %63 = arith.mulf %59, %62 : vector<1x1x128xf32>
    %64 = vector.shape_cast %6 : vector<1x128xf32> to vector<1x1x128xf32>
    %65 = arith.mulf %51, %63 : vector<1x1x128xf32>
    %66 = arith.subf %64, %65 : vector<1x1x128xf32>
    %67 = vector.broadcast %63 : vector<1x1x128xf32> to vector<2x8x128xf32>
    %68 = arith.mulf %47, %67 : vector<2x8x128xf32>
    %69 = vector.broadcast %66 : vector<1x1x128xf32> to vector<2x8x128xf32>
    %70 = arith.addf %68, %69 : vector<2x8x128xf32>
    %cst_20 = arith.constant 0.000000e+00 : f32
    %71 = vector.broadcast %cst_20 : f32 to vector<2x8x128xf32>
    %72 = arith.maximumf %70, %71 : vector<2x8x128xf32>
    %73 = vector.shape_cast %72 : vector<2x8x128xf32> to vector<2x1x8x128xf32>
    %74 = vector.extract_strided_slice %1 {offsets = [4, 0], sizes = [1, 128], strides = [1, 1]} : vector<8x128xf32> to vector<1x128xf32>
    %75 = vector.extract_strided_slice %1 {offsets = [5, 0], sizes = [1, 128], strides = [1, 1]} : vector<8x128xf32> to vector<1x128xf32>
    %76 = vector.extract_strided_slice %1 {offsets = [6, 0], sizes = [1, 128], strides = [1, 1]} : vector<8x128xf32> to vector<1x128xf32>
    %77 = vector.extract_strided_slice %1 {offsets = [7, 0], sizes = [1, 128], strides = [1, 1]} : vector<8x128xf32> to vector<1x128xf32>
    %78 = vector.shape_cast %73 : vector<2x1x8x128xf32> to vector<16x128xf32>
    %79 = arith.truncf %78 : vector<16x128xf32> to vector<16x128xbf16>
    %c0_21 = arith.constant 0 : index
    %c0_22 = arith.constant 0 : index
    %80 = vector.load %arg4[%c0_21, %c0_22] : memref<128x128xbf16, #tpu.memory_space<vmem>>, vector<128x128xbf16>
    %cst_23 = arith.constant dense<0.000000e+00> : vector<16x128xf32>
    %81 = tpu.matmul %79, %80, %cst_23 {dimension_numbers = #tpu.dot_dimension_numbers<[1], [0], [0], [1], [0, 0, 1, 1], [], []>} : vector<16x128xbf16>, vector<128x128xbf16>, vector<16x128xf32> -> vector<16x128xf32>
    %82 = vector.shape_cast %81 : vector<16x128xf32> to vector<2x1x8x128xf32>
    %c0_24 = arith.constant 0 : index
    %c0_25 = arith.constant 0 : index
    %83 = vector.load %arg1[%c0_24, %c0_25] : memref<1x1xf32, #tpu.memory_space<vmem>>, vector<1x1xf32>
    %84 = vector.extract %83[0, 0] : f32 from vector<1x1xf32>
    %85 = vector.broadcast %84 : f32 to vector<2x1x8x128xf32>
    %86 = arith.mulf %82, %85 : vector<2x1x8x128xf32>
    %87 = vector.shape_cast %74 : vector<1x128xf32> to vector<1x1x1x128xf32>
    %88 = vector.broadcast %87 : vector<1x1x1x128xf32> to vector<2x1x8x128xf32>
    %89 = arith.addf %86, %88 : vector<2x1x8x128xf32>
    %90 = vector.shape_cast %89 : vector<2x1x8x128xf32> to vector<16x128xf32>
    %91 = arith.truncf %90 : vector<16x128xf32> to vector<16x128xbf16>
    %c0_26 = arith.constant 0 : index
    %c0_27 = arith.constant 0 : index
    %92 = vector.load %arg5[%c0_26, %c0_27] : memref<128x384xbf16, #tpu.memory_space<vmem>>, vector<128x384xbf16>
    %cst_28 = arith.constant dense<0.000000e+00> : vector<16x384xf32>
    %93 = tpu.matmul %91, %92, %cst_28 {dimension_numbers = #tpu.dot_dimension_numbers<[1], [0], [0], [1], [0, 0, 1, 1], [], []>} : vector<16x128xbf16>, vector<128x384xbf16>, vector<16x384xf32> -> vector<16x384xf32>
    %94 = vector.shape_cast %93 : vector<16x384xf32> to vector<2x8x384xf32>
    %95 = vector.extract_strided_slice %94 {offsets = [0, 0, 128], sizes = [2, 8, 128], strides = [1, 1, 1]} : vector<2x8x384xf32> to vector<2x8x128xf32>
    %96 = vector.shape_cast %75 : vector<1x128xf32> to vector<1x1x128xf32>
    %97 = vector.broadcast %96 : vector<1x1x128xf32> to vector<2x8x128xf32>
    %98 = arith.addf %95, %97 : vector<2x8x128xf32>
    %99 = vector.extract_strided_slice %94 {offsets = [0, 0, 0], sizes = [2, 8, 128], strides = [1, 1, 1]} : vector<2x8x384xf32> to vector<2x8x128xf32>
    %c1_i32_29 = arith.constant 1 : i32
    %100 = tpu.dynamic_rotate %99 by %c1_i32_29 dim 1 : vector<2x8x128xf32>, i32 -> vector<2x8x128xf32>
    %c1_i32_30 = arith.constant 1 : i32
    %101 = vector.broadcast %c1_i32_30 : i32 to vector<2x8x128xi32>
    %102 = arith.cmpi sge, %2, %101 : vector<2x8x128xi32>
    %c9_i32_31 = arith.constant 9 : i32
    %103 = vector.broadcast %c9_i32_31 : i32 to vector<2x8x128xi32>
    %104 = arith.cmpi slt, %2, %103 : vector<2x8x128xi32>
    %105 = arith.andi %102, %104 : vector<2x8x128xi1>
    %cst_32 = arith.constant 0.000000e+00 : f32
    %106 = vector.broadcast %cst_32 : f32 to vector<2x8x128xf32>
    %107 = arith.select %105, %100, %106 : vector<2x8x128xi1>, vector<2x8x128xf32>
    %108 = arith.addf %98, %107 : vector<2x8x128xf32>
    %109 = vector.extract_strided_slice %94 {offsets = [0, 0, 256], sizes = [2, 8, 128], strides = [1, 1, 1]} : vector<2x8x384xf32> to vector<2x8x128xf32>
    %c7_i32_33 = arith.constant 7 : i32
    %110 = tpu.dynamic_rotate %109 by %c7_i32_33 dim 1 : vector<2x8x128xf32>, i32 -> vector<2x8x128xf32>
    %c-1_i32_34 = arith.constant -1 : i32
    %111 = vector.broadcast %c-1_i32_34 : i32 to vector<2x8x128xi32>
    %112 = arith.cmpi sge, %2, %111 : vector<2x8x128xi32>
    %c7_i32_35 = arith.constant 7 : i32
    %113 = vector.broadcast %c7_i32_35 : i32 to vector<2x8x128xi32>
    %114 = arith.cmpi slt, %2, %113 : vector<2x8x128xi32>
    %115 = arith.andi %112, %114 : vector<2x8x128xi1>
    %cst_36 = arith.constant 0.000000e+00 : f32
    %116 = vector.broadcast %cst_36 : f32 to vector<2x8x128xf32>
    %117 = arith.select %115, %110, %116 : vector<2x8x128xi1>, vector<2x8x128xf32>
    %118 = arith.addf %108, %117 : vector<2x8x128xf32>
    %cst_37 = arith.constant dense<0.000000e+00> : vector<128xf32>
    %119 = vector.multi_reduction <add>, %118, %cst_37 [0, 1] : vector<2x8x128xf32> to vector<128xf32>
    %120 = vector.shape_cast %119 : vector<128xf32> to vector<1x1x128xf32>
    %cst_38 = arith.constant 1.600000e+01 : f32
    %121 = vector.broadcast %cst_38 : f32 to vector<1x1x128xf32>
    %122 = arith.divf %120, %121 : vector<1x1x128xf32>
    %123 = vector.broadcast %122 : vector<1x1x128xf32> to vector<2x8x128xf32>
    %124 = arith.subf %118, %123 : vector<2x8x128xf32>
    %125 = arith.mulf %124, %124 : vector<2x8x128xf32>
    %cst_39 = arith.constant dense<0.000000e+00> : vector<128xf32>
    %126 = vector.multi_reduction <add>, %125, %cst_39 [0, 1] : vector<2x8x128xf32> to vector<128xf32>
    %127 = vector.shape_cast %126 : vector<128xf32> to vector<1x1x128xf32>
    %cst_40 = arith.constant 1.600000e+01 : f32
    %128 = vector.broadcast %cst_40 : f32 to vector<1x1x128xf32>
    %129 = arith.divf %127, %128 : vector<1x1x128xf32>
    %130 = vector.shape_cast %76 : vector<1x128xf32> to vector<1x1x128xf32>
    %cst_41 = arith.constant 9.99999974E-6 : f32
    %131 = vector.broadcast %cst_41 : f32 to vector<1x1x128xf32>
    %132 = arith.addf %129, %131 : vector<1x1x128xf32>
    %133 = math.rsqrt %132 : vector<1x1x128xf32>
    %134 = arith.mulf %130, %133 : vector<1x1x128xf32>
    %135 = vector.shape_cast %77 : vector<1x128xf32> to vector<1x1x128xf32>
    %136 = arith.mulf %122, %134 : vector<1x1x128xf32>
    %137 = arith.subf %135, %136 : vector<1x1x128xf32>
    %138 = vector.broadcast %134 : vector<1x1x128xf32> to vector<2x8x128xf32>
    %139 = arith.mulf %118, %138 : vector<2x8x128xf32>
    %140 = vector.broadcast %137 : vector<1x1x128xf32> to vector<2x8x128xf32>
    %141 = arith.addf %139, %140 : vector<2x8x128xf32>
    %cst_42 = arith.constant 0.000000e+00 : f32
    %142 = vector.broadcast %cst_42 : f32 to vector<2x8x128xf32>
    %143 = arith.maximumf %141, %142 : vector<2x8x128xf32>
    %144 = vector.shape_cast %143 : vector<2x8x128xf32> to vector<2x1x8x128xf32>
    %145 = arith.truncf %144 : vector<2x1x8x128xf32> to vector<2x1x8x128xbf16>
    %cst_43 = arith.constant 0.000000e+00 : f32
    %146 = vector.broadcast %cst_43 : f32 to vector<2x4xf32>
    %147 = vector.extract_strided_slice %145 {offsets = [0, 0, 0, 0], sizes = [2, 1, 1, 128], strides = [1, 1, 1, 1]} : vector<2x1x8x128xbf16> to vector<2x1x1x128xbf16>
    %148 = vector.shape_cast %147 : vector<2x1x1x128xbf16> to vector<2x128xbf16>
    %c0_44 = arith.constant 0 : index
    %c0_45 = arith.constant 0 : index
    %c0_46 = arith.constant 0 : index
    %c0_47 = arith.constant 0 : index
    %149 = vector.load %arg7[%c0_44, %c0_45, %c0_46, %c0_47] : memref<1x8x128x4xbf16, #tpu.memory_space<vmem>>, vector<1x1x128x4xbf16>
    %150 = vector.shape_cast %149 : vector<1x1x128x4xbf16> to vector<128x4xbf16>
    %cst_48 = arith.constant dense<0.000000e+00> : vector<2x4xf32>
    %151 = tpu.matmul %148, %150, %cst_48 {dimension_numbers = #tpu.dot_dimension_numbers<[1], [0], [0], [1], [0, 0, 1, 1], [], []>} : vector<2x128xbf16>, vector<128x4xbf16>, vector<2x4xf32> -> vector<2x4xf32>
    %152 = arith.addf %146, %151 : vector<2x4xf32>
    %153 = vector.extract_strided_slice %145 {offsets = [0, 0, 1, 0], sizes = [2, 1, 1, 128], strides = [1, 1, 1, 1]} : vector<2x1x8x128xbf16> to vector<2x1x1x128xbf16>
    %154 = vector.shape_cast %153 : vector<2x1x1x128xbf16> to vector<2x128xbf16>
    %c0_49 = arith.constant 0 : index
    %c1 = arith.constant 1 : index
    %c0_50 = arith.constant 0 : index
    %c0_51 = arith.constant 0 : index
    %155 = vector.load %arg7[%c0_49, %c1, %c0_50, %c0_51] : memref<1x8x128x4xbf16, #tpu.memory_space<vmem>>, vector<1x1x128x4xbf16>
    %156 = vector.shape_cast %155 : vector<1x1x128x4xbf16> to vector<128x4xbf16>
    %cst_52 = arith.constant dense<0.000000e+00> : vector<2x4xf32>
    %157 = tpu.matmul %154, %156, %cst_52 {dimension_numbers = #tpu.dot_dimension_numbers<[1], [0], [0], [1], [0, 0, 1, 1], [], []>} : vector<2x128xbf16>, vector<128x4xbf16>, vector<2x4xf32> -> vector<2x4xf32>
    %158 = arith.addf %152, %157 : vector<2x4xf32>
    %159 = vector.extract_strided_slice %145 {offsets = [0, 0, 2, 0], sizes = [2, 1, 1, 128], strides = [1, 1, 1, 1]} : vector<2x1x8x128xbf16> to vector<2x1x1x128xbf16>
    %160 = vector.shape_cast %159 : vector<2x1x1x128xbf16> to vector<2x128xbf16>
    %c0_53 = arith.constant 0 : index
    %c2 = arith.constant 2 : index
    %c0_54 = arith.constant 0 : index
    %c0_55 = arith.constant 0 : index
    %161 = vector.load %arg7[%c0_53, %c2, %c0_54, %c0_55] : memref<1x8x128x4xbf16, #tpu.memory_space<vmem>>, vector<1x1x128x4xbf16>
    %162 = vector.shape_cast %161 : vector<1x1x128x4xbf16> to vector<128x4xbf16>
    %cst_56 = arith.constant dense<0.000000e+00> : vector<2x4xf32>
    %163 = tpu.matmul %160, %162, %cst_56 {dimension_numbers = #tpu.dot_dimension_numbers<[1], [0], [0], [1], [0, 0, 1, 1], [], []>} : vector<2x128xbf16>, vector<128x4xbf16>, vector<2x4xf32> -> vector<2x4xf32>
    %164 = arith.addf %158, %163 : vector<2x4xf32>
    %165 = vector.extract_strided_slice %145 {offsets = [0, 0, 3, 0], sizes = [2, 1, 1, 128], strides = [1, 1, 1, 1]} : vector<2x1x8x128xbf16> to vector<2x1x1x128xbf16>
    %166 = vector.shape_cast %165 : vector<2x1x1x128xbf16> to vector<2x128xbf16>
    %c0_57 = arith.constant 0 : index
    %c3 = arith.constant 3 : index
    %c0_58 = arith.constant 0 : index
    %c0_59 = arith.constant 0 : index
    %167 = vector.load %arg7[%c0_57, %c3, %c0_58, %c0_59] : memref<1x8x128x4xbf16, #tpu.memory_space<vmem>>, vector<1x1x128x4xbf16>
    %168 = vector.shape_cast %167 : vector<1x1x128x4xbf16> to vector<128x4xbf16>
    %cst_60 = arith.constant dense<0.000000e+00> : vector<2x4xf32>
    %169 = tpu.matmul %166, %168, %cst_60 {dimension_numbers = #tpu.dot_dimension_numbers<[1], [0], [0], [1], [0, 0, 1, 1], [], []>} : vector<2x128xbf16>, vector<128x4xbf16>, vector<2x4xf32> -> vector<2x4xf32>
    %170 = arith.addf %164, %169 : vector<2x4xf32>
    %171 = vector.extract_strided_slice %145 {offsets = [0, 0, 4, 0], sizes = [2, 1, 1, 128], strides = [1, 1, 1, 1]} : vector<2x1x8x128xbf16> to vector<2x1x1x128xbf16>
    %172 = vector.shape_cast %171 : vector<2x1x1x128xbf16> to vector<2x128xbf16>
    %c0_61 = arith.constant 0 : index
    %c4 = arith.constant 4 : index
    %c0_62 = arith.constant 0 : index
    %c0_63 = arith.constant 0 : index
    %173 = vector.load %arg7[%c0_61, %c4, %c0_62, %c0_63] : memref<1x8x128x4xbf16, #tpu.memory_space<vmem>>, vector<1x1x128x4xbf16>
    %174 = vector.shape_cast %173 : vector<1x1x128x4xbf16> to vector<128x4xbf16>
    %cst_64 = arith.constant dense<0.000000e+00> : vector<2x4xf32>
    %175 = tpu.matmul %172, %174, %cst_64 {dimension_numbers = #tpu.dot_dimension_numbers<[1], [0], [0], [1], [0, 0, 1, 1], [], []>} : vector<2x128xbf16>, vector<128x4xbf16>, vector<2x4xf32> -> vector<2x4xf32>
    %176 = arith.addf %170, %175 : vector<2x4xf32>
    %177 = vector.extract_strided_slice %145 {offsets = [0, 0, 5, 0], sizes = [2, 1, 1, 128], strides = [1, 1, 1, 1]} : vector<2x1x8x128xbf16> to vector<2x1x1x128xbf16>
    %178 = vector.shape_cast %177 : vector<2x1x1x128xbf16> to vector<2x128xbf16>
    %c0_65 = arith.constant 0 : index
    %c5 = arith.constant 5 : index
    %c0_66 = arith.constant 0 : index
    %c0_67 = arith.constant 0 : index
    %179 = vector.load %arg7[%c0_65, %c5, %c0_66, %c0_67] : memref<1x8x128x4xbf16, #tpu.memory_space<vmem>>, vector<1x1x128x4xbf16>
    %180 = vector.shape_cast %179 : vector<1x1x128x4xbf16> to vector<128x4xbf16>
    %cst_68 = arith.constant dense<0.000000e+00> : vector<2x4xf32>
    %181 = tpu.matmul %178, %180, %cst_68 {dimension_numbers = #tpu.dot_dimension_numbers<[1], [0], [0], [1], [0, 0, 1, 1], [], []>} : vector<2x128xbf16>, vector<128x4xbf16>, vector<2x4xf32> -> vector<2x4xf32>
    %182 = arith.addf %176, %181 : vector<2x4xf32>
    %183 = vector.extract_strided_slice %145 {offsets = [0, 0, 6, 0], sizes = [2, 1, 1, 128], strides = [1, 1, 1, 1]} : vector<2x1x8x128xbf16> to vector<2x1x1x128xbf16>
    %184 = vector.shape_cast %183 : vector<2x1x1x128xbf16> to vector<2x128xbf16>
    %c0_69 = arith.constant 0 : index
    %c6 = arith.constant 6 : index
    %c0_70 = arith.constant 0 : index
    %c0_71 = arith.constant 0 : index
    %185 = vector.load %arg7[%c0_69, %c6, %c0_70, %c0_71] : memref<1x8x128x4xbf16, #tpu.memory_space<vmem>>, vector<1x1x128x4xbf16>
    %186 = vector.shape_cast %185 : vector<1x1x128x4xbf16> to vector<128x4xbf16>
    %cst_72 = arith.constant dense<0.000000e+00> : vector<2x4xf32>
    %187 = tpu.matmul %184, %186, %cst_72 {dimension_numbers = #tpu.dot_dimension_numbers<[1], [0], [0], [1], [0, 0, 1, 1], [], []>} : vector<2x128xbf16>, vector<128x4xbf16>, vector<2x4xf32> -> vector<2x4xf32>
    %188 = arith.addf %182, %187 : vector<2x4xf32>
    %189 = vector.extract_strided_slice %145 {offsets = [0, 0, 7, 0], sizes = [2, 1, 1, 128], strides = [1, 1, 1, 1]} : vector<2x1x8x128xbf16> to vector<2x1x1x128xbf16>
    %190 = vector.shape_cast %189 : vector<2x1x1x128xbf16> to vector<2x128xbf16>
    %c0_73 = arith.constant 0 : index
    %c7 = arith.constant 7 : index
    %c0_74 = arith.constant 0 : index
    %c0_75 = arith.constant 0 : index
    %191 = vector.load %arg7[%c0_73, %c7, %c0_74, %c0_75] : memref<1x8x128x4xbf16, #tpu.memory_space<vmem>>, vector<1x1x128x4xbf16>
    %192 = vector.shape_cast %191 : vector<1x1x128x4xbf16> to vector<128x4xbf16>
    %cst_76 = arith.constant dense<0.000000e+00> : vector<2x4xf32>
    %193 = tpu.matmul %190, %192, %cst_76 {dimension_numbers = #tpu.dot_dimension_numbers<[1], [0], [0], [1], [0, 0, 1, 1], [], []>} : vector<2x128xbf16>, vector<128x4xbf16>, vector<2x4xf32> -> vector<2x4xf32>
    %194 = arith.addf %188, %193 : vector<2x4xf32>
    %c0_77 = arith.constant 0 : index
    %c0_78 = arith.constant 0 : index
    %195 = vector.load %arg8[%c0_77, %c0_78] : memref<1x4xf32, #tpu.memory_space<vmem>>, vector<1x4xf32>
    %196 = vector.broadcast %195 : vector<1x4xf32> to vector<2x4xf32>
    %197 = arith.addf %194, %196 : vector<2x4xf32>
    %c0_79 = arith.constant 0 : index
    %c0_80 = arith.constant 0 : index
    %198 = vector.load %arg9[%c0_79, %c0_80] : memref<2x4xf32, #tpu.memory_space<vmem>>, vector<2x4xf32>
    tpu.vector_store %arg9[%c0_79, %c0_80], %197 {strides = array<i32>} : memref<2x4xf32, #tpu.memory_space<vmem>>, vector<2x4xf32>,
    return
  }
}

</mosaic_0001>

<bundles_post_ra>
// kernel: stgnn_forward.1
= control target key start
LH: loop header
LB: loop body
LE: loop exit
PB: predicated region body
PF: predicated region fallthrough
CT: control target
= control target key end

     0   :  { %s3073_s0 = inlined_call_operand.vmem [shape: f32[2,1,8,1], index: 0, kind: input, shape index: {}]   ;;  %s3074_s1 = inlined_call_operand.<no memory space> [shape: f32[1,1], index: 1, kind: input, shape index: {}]   ;;  %s3075_s2 = inlined_call_operand.vmem [shape: f32[1,128], index: 2, kind: input, shape index: {}]   ;;  %s3076_s3 = inlined_call_operand.vmem [shape: bf16[128,384], index: 3, kind: input, shape index: {}]   ;;  %s3077_s4 = inlined_call_operand.vmem [shape: bf16[128,128], index: 4, kind: input, shape index: {}]   ;;  %s3078_s5 = inlined_call_operand.vmem [shape: bf16[128,384], index: 5, kind: input, shape index: {}]   ;;  %s3079_s6 = inlined_call_operand.vmem [shape: f32[8,128], index: 6, kind: input, shape index: {}]   ;;  %s3080_s7 = inlined_call_operand.vmem [shape: bf16[1,8,128,4], index: 7, kind: input, shape index: {}]   ;;  %s3081_s8 = inlined_call_operand.vmem [shape: f32[1,4], index: 8, kind: input, shape index: {}]   ;;  %s3082_s9 = inlined_call_operand.hbm [shape: f32[2,4], index: 9, kind: output, shape index: {}]  }
   0x1   :  { %v14_v0 = vstv %s3074_s1 }
   0x2   :  { %15 = vst [vmem:[#allocation2] sm:$0x1] %v14_v0 }
   0x3   :  { %v36_v1 = vld [vmem:[%s3073_s0] sm:$0xff]  ;;  %v2440_v3 = vmov 0   ;;  %v37_v4 = vld [vmem:[%s3073_s0 + $0x8] sm:$0xff]  ;;  %v2441_v6 = vmov 0.0   ;;  %v2286_v13 = vld [vmem:[%s3076_s3 + $0x30] ss:$12 sps:$4 sm:$0xff]  }
   0x4   :  { %2275 = vset.pattern.permute.xlu0 %v2440_v3  ;;  %v2276_v5 = vld [vmem:[%s3076_s3 + $0x4] ss:$12 sps:$4 sm:$0xff]   ;;  %2049 = vmatprep.subr.bf16.mxu1 %v2441_v6  ;;  %v2278_v7 = vld [vmem:[%s3076_s3] ss:$12 sps:$4 sm:$0xff]   ;;  %v2279_v8 = vld [vmem:[%s3076_s3 + $0x8] ss:$12 sps:$4 sm:$0xff]  }
   0x5   :  { %44 = vperm.xlu0 %2275, %v36_v1   ;;  %264 = vmatprep.mubr.bf16.mxu0 %v2440_v3  ;;  %v2280_v9 = vld [vmem:[%s3076_s3 + $0x1c] ss:$12 sps:$4 sm:$0xff]   ;;  %v2282_v10 = vld [vmem:[%s3076_s3 + $0x18] ss:$12 sps:$4 sm:$0xff]   ;;  %v2283_v11 = vld [vmem:[%s3076_s3 + $0x20] ss:$12 sps:$4 sm:$0xff]  }
   0x6   :  { %232 = vmatprep.subr.bf16.mxu0 %v2276_v5  ;;  %2050 = vmatpush3.bf16.msra.mxu1 %v2279_v8  ;;  %v2284_v12 = vld [vmem:[%s3076_s3 + $0x34] ss:$12 sps:$4 sm:$0xff]   ;;  %v2287_v14 = vld [vmem:[%s3076_s3 + $0x38] ss:$12 sps:$4 sm:$0xff]   ;;  %vm2442_vm0 = vmmov 0  }
   0x7   :  { %233 = vmatpush1.bf16.msra.mxu0 %v2278_v7  ;;  %2051 = vmatprep.subr.bf16.mxu1 %v2441_v6  ;;  %v2288_v15 = vld [vmem:[%s3076_s3 + $0x4c] ss:$12 sps:$4 sm:$0xff]   ;;  %v2290_v16 = vld [vmem:[%s3076_s3 + $0x48] ss:$12 sps:$4 sm:$0xff]   ;;  %v2291_v17 = vld [vmem:[%s3076_s3 + $0x50] ss:$12 sps:$4 sm:$0xff]  }
   0x8   :  { %234 = vmatprep.subr.bf16.mxu0 %v2280_v9  ;;  %2065 = vmatprep.mubr.msk.bf16.mxu1 %vm2442_vm0, %v2441_v6  ;;  %v2292_v18 = vld [vmem:[%s3076_s3 + $0x64] ss:$12 sps:$4 sm:$0xff]   ;;  %v2294_v19 = vld [vmem:[%s3076_s3 + $0x60] ss:$12 sps:$4 sm:$0xff]   ;;  %v2295_v20 = vld [vmem:[%s3076_s3 + $0x68] ss:$12 sps:$4 sm:$0xff]  }
   0x9   :  { %v60_v2 = vld [vmem:[#allocation2] sm:$0x1]  ;;  %49 = vperm.xlu0 %2275, %v37_v4   ;;  %v2296_v21 = vld [vmem:[%s3076_s3 + $0x7c] ss:$12 sps:$4 sm:$0xff]   ;;  %v2298_v22 = vld [vmem:[%s3076_s3 + $0x78] ss:$12 sps:$4 sm:$0xff]  }
   0xa   :  { %2269 = vpush %v60_v2  ;;  %2052 = vmatpush3.bf16.msra.mxu1 %v2283_v11  ;;  %v2299_v23 = vld [vmem:[%s3076_s3 + $0x80] ss:$12 sps:$4 sm:$0xff]   ;;  %v2302_v25 = vld [vmem:[%s3076_s3 + $0x90] ss:$12 sps:$4 sm:$0xff]   ;;  %v2303_v26 = vld [vmem:[%s3076_s3 + $0x98] ss:$12 sps:$4 sm:$0xff]  }
   0xb   :  { %235 = vmatpush1.bf16.msra.mxu0 %v2282_v10  ;;  %2053 = vmatprep.subr.bf16.mxu1 %v2441_v6  ;;  %v2300_v24 = vld [vmem:[%s3076_s3 + $0x94] ss:$12 sps:$4 sm:$0xff]   ;;  %v2304_v27 = vld [vmem:[%s3076_s3 + $0xac] ss:$12 sps:$4 sm:$0xff]   ;;  %v2307_v29 = vld [vmem:[%s3076_s3 + $0xb0] ss:$12 sps:$4 sm:$0xff]  }
   0xc   :  { %236 = vmatprep.subr.bf16.mxu0 %v2284_v12  ;;  %v2306_v28 = vld [vmem:[%s3076_s3 + $0xa8] ss:$12 sps:$4 sm:$0xff]  }
   0xe   :  { %2054 = vmatpush3.bf16.msra.mxu1 %v2287_v14 }
   0xf   :  { %237 = vmatpush1.bf16.msra.mxu0 %v2286_v13  ;;  %2055 = vmatprep.subr.bf16.mxu1 %v2441_v6 }
  0x10   :  { %238 = vmatprep.subr.bf16.mxu0 %v2288_v15 }
  0x12   :  { %2056 = vmatpush3.bf16.msra.mxu1 %v2291_v17 }
  0x13   :  { %239 = vmatpush1.bf16.msra.mxu0 %v2290_v16  ;;  %2057 = vmatprep.subr.bf16.mxu1 %v2441_v6 }
  0x14   :  { %240 = vmatprep.subr.bf16.mxu0 %v2292_v18 }
  0x16   :  { %2058 = vmatpush3.bf16.msra.mxu1 %v2295_v20 }
  0x17   :  { %241 = vmatpush1.bf16.msra.mxu0 %v2294_v19  ;;  %2059 = vmatprep.subr.bf16.mxu1 %v2441_v6 }
  0x18   :  { %242 = vmatprep.subr.bf16.mxu0 %v2296_v21 }
  0x1a   :  { %2060 = vmatpush3.bf16.msra.mxu1 %v2299_v23 }
  0x1b   :  { %243 = vmatpush1.bf16.msra.mxu0 %v2298_v22  ;;  %2061 = vmatprep.subr.bf16.mxu1 %v2441_v6 }
  0x1c   :  { %244 = vmatprep.subr.bf16.mxu0 %v2300_v24 }
  0x1e   :  { %2062 = vmatpush3.bf16.msra.mxu1 %v2303_v26 }
  0x1f   :  { %245 = vmatpush1.bf16.msra.mxu0 %v2302_v25  ;;  %2063 = vmatprep.subr.bf16.mxu1 %v2441_v6 }
  0x20   :  { %246 = vmatprep.subr.bf16.mxu0 %v2304_v27 }
  0x22   :  { %2064 = vmatpush3.bf16.msra.mxu1 %v2307_v29 }
  0x23   :  { %247 = vmatpush1.bf16.msra.mxu0 %v2306_v28 }
  0x24   :  { %2069 = vmatprep.subr.bf16.mxu0 %v2441_v6 }
  0x25   :  { %16 = vsyncpa [#allocation4], 0  ;;  %v39_v30 = vlaneseq  ;;  %v1716_v32 = vld [vmem:[%s3075_s2] ss:$0 sm:$0xff]  ;;  %v2309_v47 = vld [vmem:[%s3077_s4 + $0x8] sm:$0xff]   ;;  %vm842_vm3 = vcmask 1041409  }
  0x26   :  { %v2597_v36 = vld [vmem:[%s3079_s6] sm:$0xff]  ;;  %v2310_v48 = vld [vmem:[%s3077_s4 + $0x10] sm:$0xff]   ;;  %v2311_v49 = vld [vmem:[%s3077_s4 + $0x18] sm:$0xff]   ;;  %s2443_s19 = smov [#allocation3]   ;;  %vm1700_vm4 = vcmask 25600  }
  0x27   :  { %v2588_v31 = vshrl.u32 %v39_v30, 7  ;;  %v2308_v46 = vld [vmem:[%s3077_s4] sm:$0xff]   ;;  %v2313_v51 = vld [vmem:[%s3077_s4 + $0x28] sm:$0xff]   ;;  %v2314_v52 = vld [vmem:[%s3077_s4 + $0x30] sm:$0xff]   ;;  %s1708_s2 = sshll.u32 %s2443_s19, 4  ;;  %s1709_s2 = int_to_ptr.vmem [resolvable:$true] %s1708_s2 }
  0x28   :  { %v2312_v50 = vld [vmem:[%s3077_s4 + $0x20] sm:$0xff]   ;;  %v2315_v53 = vld [vmem:[%s3077_s4 + $0x38] sm:$0xff]   ;;  %v2328_v61 = vld [vmem:[%s3078_s5 + $0x48] ss:$12 sps:$4 sm:$0xff]   ;;  %s2416_s6 = scalar_lea.vmem %s1709_s2, 32  ;;  %p2421_p1 = scmp.lt.s32.totalorder %s1709_s2, %s1709_s2 }
  0x29   :  { %v67_v35 = vsub.s32 0, %v2588_v31  ;;  %v2316_v54 = vld [vmem:[%s3078_s5] ss:$12 sps:$4 sm:$0xff]   ;;  %v2318_v55 = vld [vmem:[%s3078_s5 + $0x4] ss:$12 sps:$4 sm:$0xff]   ;;  %v318_v2 = vsub.s32 1, %v2588_v31  ;;  %p2417_p0 = scmp.ne.s32.totalorder %s1709_s2, %s2416_s6  ;;  %p2422_p2 = scmp.lt.s32.totalorder %s2416_s6, %s2416_s6 }
  0x2a   :  { %v2322_v56 = vld [vmem:[%s3078_s5 + $0x1c] ss:$12 sps:$4 sm:$0xff]   ;;  %658 = vmatprep.subr.bf16.mxu1 %v2318_v55  ;;  %v2320_v57 = vld [vmem:[%s3078_s5 + $0x18] ss:$12 sps:$4 sm:$0xff]   ;;  %v2326_v58 = vld [vmem:[%s3078_s5 + $0x34] ss:$12 sps:$4 sm:$0xff]  }
  0x2b   :  { %v68_v40 = vrot.slane %v2597_v36, %v67_v35  ;;  %v2324_v59 = vld [vmem:[%s3078_s5 + $0x30] ss:$12 sps:$4 sm:$0xff]   ;;  %v2330_v60 = vld [vmem:[%s3078_s5 + $0x4c] ss:$12 sps:$4 sm:$0xff]   ;;  %vm324_vm1 = vcmp.ge.s32.totalorder %v2588_v31, 1  ;;  %vm334_vm2 = vcmp.lt.s32.totalorder %v2588_v31, 7  ;;  %p2423_p3 = por %p2422_p2, %p2421_p1 }
  0x2c   :  { %v2334_v62 = vld [vmem:[%s3078_s5 + $0x64] ss:$12 sps:$4 sm:$0xff]   ;;  %v2332_v63 = vld [vmem:[%s3078_s5 + $0x60] ss:$12 sps:$4 sm:$0xff]   ;;  %v2338_v0 = vld [vmem:[%s3078_s5 + $0x7c] ss:$12 sps:$4 sm:$0xff]  }
  0x2d   :  { %v2336_v1 = vld [vmem:[%s3078_s5 + $0x78] ss:$12 sps:$4 sm:$0xff]   ;;  %p2424_p4 = pnand %p2423_p3, %p2417_p0 }
  0x3b   :  { %s2270_s18 = spop %2269 }
  0x3c   :  { %v2599_v37 = vstv %s2270_s18 }
  0x84   :  { %v45_v33 = vpop.permute.xlu0 %44 }
  0x85   :  { %v58_v34 = vmul.f32 %v1716_v32, %v45_v33 }
  0x87   :  { %v63_v39 = vmul.f32 %v2599_v37, %v58_v34 }
  0x88   :  { %v50_v38 = vpop.permute.xlu0 %49 }
  0x89   :  { %v59_v41 = vmul.f32 %v1716_v32, %v50_v38  ;;  %v69_v43 = vadd.f32 %v68_v40, %v63_v39 }
  0x8b   :  { %v64_v42 = vmul.f32 %v2599_v37, %v59_v41 }
  0x8d   :  { %v70_v44 = vadd.f32 %v68_v40, %v64_v42 }
  0x8f   :  { %v71_v45 = vpack.c.bf16 %v70_v44, %v69_v43 }
  0x91   :  { %265 = vmatmul.mubr.bf16.vlgmr.msra.gmra.mrb[0].mxu0 %v71_v45  ;;  %2066 = vmatmul.mubr.bf16.vlgmr.msra.gmra.mrb[0].mxu1 %v71_v45 }
  0x92   :  { %2085 = vmatprep.mubr.msk.bf16.mxu0 %vm2442_vm0, %v2441_v6  ;;  %690 = vmatprep.mubr.bf16.mxu1 %v2440_v3  ;;  %v319_v3 = vrot.slane %v2597_v36, %v318_v2  ;;  %v2319_v2 = vld [vmem:[%s3078_s5 + $0x8] ss:$12 sps:$4 sm:$0xff]  }
  0x93   :  { %2070 = vmatpush3.bf16.msra.mxu0 %v2308_v46  ;;  %659 = vmatpush1.bf16.msra.mxu1 %v2316_v54 }
  0x94   :  { %2071 = vmatprep.subr.bf16.mxu0 %v2441_v6  ;;  %660 = vmatprep.subr.bf16.mxu1 %v2322_v56 }
  0x97   :  { %2072 = vmatpush3.bf16.msra.mxu0 %v2309_v47  ;;  %661 = vmatpush1.bf16.msra.mxu1 %v2320_v57 }
  0x98   :  { %2073 = vmatprep.subr.bf16.mxu0 %v2441_v6  ;;  %662 = vmatprep.subr.bf16.mxu1 %v2326_v58 }
  0x9b   :  { %2074 = vmatpush3.bf16.msra.mxu0 %v2310_v48  ;;  %663 = vmatpush1.bf16.msra.mxu1 %v2324_v59  ;;  %v377_v59 = vsub.s32 3, %v2588_v31 }
  0x9c   :  { %2075 = vmatprep.subr.bf16.mxu0 %v2441_v6  ;;  %664 = vmatprep.subr.bf16.mxu1 %v2330_v60 }
  0x9f   :  { %2076 = vmatpush3.bf16.msra.mxu0 %v2311_v49  ;;  %665 = vmatpush1.bf16.msra.mxu1 %v2328_v61 }
  0xa0   :  { %2077 = vmatprep.subr.bf16.mxu0 %v2441_v6  ;;  %666 = vmatprep.subr.bf16.mxu1 %v2334_v62 }
  0xa3   :  { %2078 = vmatpush3.bf16.msra.mxu0 %v2312_v50  ;;  %667 = vmatpush1.bf16.msra.mxu1 %v2332_v63 }
  0xa4   :  { %2079 = vmatprep.subr.bf16.mxu0 %v2441_v6  ;;  %668 = vmatprep.subr.bf16.mxu1 %v2338_v0 }
  0xa7   :  { %2080 = vmatpush3.bf16.msra.mxu0 %v2313_v51  ;;  %669 = vmatpush1.bf16.msra.mxu1 %v2336_v1  ;;  %v371_v51 = vsub.s32 2, %v2588_v31 }
  0xa8   :  { %2081 = vmatprep.subr.bf16.mxu0 %v2441_v6 }
  0xab   :  { %2082 = vmatpush3.bf16.msra.mxu0 %v2314_v52 }
  0xac   :  { %2083 = vmatprep.subr.bf16.mxu0 %v2441_v6 }
  0xaf   :  { %2084 = vmatpush3.bf16.msra.mxu0 %v2315_v53 }
  0xb0   :  { %2089 = vmatprep.subr.bf16.mxu0 %v2441_v6 }
 0x164   :  { %v266_v4 = vpop.f32.mrb[0].mxu0  ;;  %v309_v5 = vpop.f32.mrb[0].mxu1 }
 0x165   :  { %v322_v7 = vrot.slane %v266_v4, 7  ;;  %v331_v8 = vrot.slane %v309_v5, 1  ;;  %v268_v9 = vpop.f32.mrb[1].mxu0  ;;  %v2067_v10 = vpop.f32.mrb[1].mxu1  ;;  %v2323_v4 = vld [vmem:[%s3078_s5 + $0x20] ss:$12 sps:$4 sm:$0xff]  }
 0x166   :  { %v320_v11 = vadd.f32 %v319_v3, %v268_v9  ;;  %v270_v12 = vpop.f32.mrb[2].mxu0  ;;  %v312_v13 = vpop.f32.mrb[2].mxu1  ;;  %v2327_v5 = vld [vmem:[%s3078_s5 + $0x38] ss:$12 sps:$4 sm:$0xff]   ;;  %v2339_v9 = vld [vmem:[%s3078_s5 + $0x80] ss:$12 sps:$4 sm:$0xff]  }
 0x167   :  { %v327_v14 = vsel %vm324_vm1, %v322_v7, 0.0  ;;  %v323_v15 = vrot.slane %v270_v12, 7  ;;  %v332_v16 = vrot.slane %v312_v13, 1  ;;  %v272_v17 = vpop.f32.mrb[3].mxu0  ;;  %v2068_v18 = vpop.f32.mrb[3].mxu1  ;;  %v336_v21 = vsel %vm334_vm2, %v331_v8, 0.0 }
 0x168   :  { %v329_v19 = vadd.f32 %v327_v14, %v320_v11  ;;  %v321_v20 = vadd.f32 %v319_v3, %v272_v17  ;;  %v2331_v7 = vld [vmem:[%s3078_s5 + $0x50] ss:$12 sps:$4 sm:$0xff]   ;;  %v2335_v8 = vld [vmem:[%s3078_s5 + $0x68] ss:$12 sps:$4 sm:$0xff]   ;;  %v2343_v12 = vld [vmem:[%s3078_s5 + $0x98] ss:$12 sps:$4 sm:$0xff]  }
 0x169   :  { %v328_v22 = vsel %vm324_vm1, %v323_v15, 0.0  ;;  %v337_v25 = vsel %vm334_vm2, %v332_v16, 0.0  ;;  %v2342_v10 = vld [vmem:[%s3078_s5 + $0x94] ss:$12 sps:$4 sm:$0xff]   ;;  %v2340_v11 = vld [vmem:[%s3078_s5 + $0x90] ss:$12 sps:$4 sm:$0xff]  }
 0x16a   :  { %v338_v23 = vadd.f32 %v336_v21, %v329_v19  ;;  %v330_v24 = vadd.f32 %v328_v22, %v321_v20  ;;  %670 = vmatprep.subr.bf16.mxu1 %v2342_v10  ;;  %v2346_v13 = vld [vmem:[%s3078_s5 + $0xac] ss:$12 sps:$4 sm:$0xff]   ;;  %v2344_v14 = vld [vmem:[%s3078_s5 + $0xa8] ss:$12 sps:$4 sm:$0xff]   ;;  %v2347_v15 = vld [vmem:[%s3078_s5 + $0xb0] ss:$12 sps:$4 sm:$0xff]  }
 0x16b   :  { %671 = vmatpush1.bf16.msra.mxu1 %v2340_v11  ;;  %v493_v16 = vsub.s32 4, %v2588_v31 }
 0x16c   :  { %v339_v26 = vadd.f32 %v337_v25, %v330_v24  ;;  %672 = vmatprep.subr.bf16.mxu1 %v2346_v13 }
 0x16d   :  { %v494_v19 = vrot.slane %v2597_v36, %v493_v16 }
 0x16e   :  { %v340_v27 = vadd.f32 %v339_v26, %v338_v23 }
 0x16f   :  { %673 = vmatpush1.bf16.msra.mxu1 %v2344_v14 }
 0x170   :  { %v341_v28 = vrot.slane %v340_v27, 4  ;;  %2109 = vmatprep.subr.bf16.mxu1 %v2441_v6 }
 0x172   :  { %v342_v29 = vadd.f32 %v341_v28, %v340_v27  ;;  %v2348_v27 = vld [vmem:[%s3080_s7 + $0x40] sm:$0xff]   ;;  %v2350_v28 = vld [vmem:[%s3080_s7 + $0x48] sm:$0xff]  }
 0x174   :  { %v343_v30 = vrot.slane %v342_v29, 2 }
 0x176   :  { %v344_v32 = vadd.f32 %v343_v30, %v342_v29  ;;  %v2351_v29 = vld [vmem:[%s3080_s7 + $0x8] sm:$0xff]   ;;  %v2352_v30 = vld [vmem:[%s3080_s7 + $0x50] sm:$0xff]  }
 0x178   :  { %v345_v33 = vrot.slane %v344_v32, 1 }
 0x17a   :  { %v346_v34 = vadd.f32 %v345_v33, %v344_v32  ;;  %v2353_v32 = vld [vmem:[%s3080_s7 + $0x10] sm:$0xff]   ;;  %v2354_v33 = vld [vmem:[%s3080_s7 + $0x58] sm:$0xff]  }
 0x17c   :  { %v348_v35 = vmul.f32 0.0625, %v346_v34  ;;  %v2355_v34 = vld [vmem:[%s3080_s7 + $0x18] sm:$0xff]  }
 0x17e   :  { %v349_v38 = vsub.f32 %v338_v23, %v348_v35  ;;  %v350_v39 = vsub.f32 %v339_v26, %v348_v35 }
 0x180   :  { %v351_v40 = vmul.f32 %v349_v38, %v349_v38  ;;  %v352_v41 = vmul.f32 %v350_v39, %v350_v39  ;;  %v2357_v38 = vld [vmem:[%s3080_s7 + $0x20] sm:$0xff]   ;;  %v2358_v39 = vld [vmem:[%s3080_s7 + $0x68] sm:$0xff]  }
 0x182   :  { %v353_v42 = vadd.f32 %v352_v41, %v351_v40  ;;  %v2359_v40 = vld [vmem:[%s3080_s7 + $0x28] sm:$0xff]   ;;  %v2360_v41 = vld [vmem:[%s3080_s7 + $0x70] sm:$0xff]  }
 0x184   :  { %v354_v43 = vrot.slane %v353_v42, 4 }
 0x186   :  { %v355_v44 = vadd.f32 %v354_v43, %v353_v42  ;;  %v2361_v42 = vld [vmem:[%s3080_s7 + $0x30] sm:$0xff]   ;;  %v2362_v43 = vld [vmem:[%s3080_s7 + $0x78] sm:$0xff]  }
 0x188   :  { %v356_v45 = vrot.slane %v355_v44, 2 }
 0x18a   :  { %v357_v46 = vadd.f32 %v356_v45, %v355_v44  ;;  %v2363_v44 = vld [vmem:[%s3080_s7 + $0x38] sm:$0xff]   ;;  %v744_v45 = vsub.s32 5, %v2588_v31 }
 0x18c   :  { %v358_v47 = vrot.slane %v357_v46, 1 }
 0x18e   :  { %v359_v48 = vadd.f32 %v358_v47, %v357_v46  ;;  %v745_v46 = vrot.slane %v2597_v36, %v744_v45 }
 0x190   :  { %v360_v49 = vmul.f32 0.0625, %v359_v48 }
 0x192   :  { %v361_v50 = vadd.f32 1e-05, %v360_v49 }
 0x194   :  { %2412 = vrsqrt.f32 %v361_v50 }
 0x19e   :  { %v2413_v52 = vpop.eup %2412 }
 0x19f   :  { %v363_v53 = vmul.f32 %v2413_v52, %v2597_v36 }
 0x1a1   :  { %v364_v54 = vmul.f32 %v363_v53, %v348_v35  ;;  %v372_v55 = vrot.slane %v363_v53, %v371_v51  ;;  %v2356_v35 = vld [vmem:[%s3080_s7 + $0x60] sm:$0xff]  }
 0x1a3   :  { %v366_v56 = vrot.slane %v364_v54, 7  ;;  %v374_v57 = vmul.f32 %v372_v55, %v339_v26  ;;  %v373_v58 = vmul.f32 %v372_v55, %v338_v23 }
 0x1a5   :  { %v368_v60 = vsub.f32 %v2597_v36, %v366_v56 }
 0x1a7   :  { %v378_v61 = vrot.slane %v368_v60, %v377_v59 }
 0x1a9   :  { %v379_v62 = vadd.f32 %v378_v61, %v373_v58  ;;  %v380_v63 = vadd.f32 %v378_v61, %v374_v57 }
 0x1ab   :  { %v381_v0 = vmax.f32 %v379_v62, 0.0  ;;  %v382_v1 = vmax.f32 %v380_v63, 0.0 }
 0x1ad   :  { %v383_v3 = vpack.c.bf16 %v382_v1, %v381_v0 }
 0x1af   :  { %2086 = vmatmul.mubr.bf16.vlgmr.msra.gmra.mrb[4].mxu0 %v383_v3 }
 0x1b0   :  { %2090 = vmatpush3.bf16.msra.mxu0 %v2319_v2  ;;  %2105 = vmatprep.mubr.msk.bf16.mxu0 %vm2442_vm0, %v2441_v6 }
 0x1b1   :  { %2091 = vmatprep.subr.bf16.mxu0 %v2441_v6 }
 0x1b4   :  { %2092 = vmatpush3.bf16.msra.mxu0 %v2323_v4 }
 0x1b5   :  { %2093 = vmatprep.subr.bf16.mxu0 %v2441_v6 }
 0x1b8   :  { %2094 = vmatpush3.bf16.msra.mxu0 %v2327_v5 }
 0x1b9   :  { %2095 = vmatprep.subr.bf16.mxu0 %v2441_v6 }
 0x1bc   :  { %2096 = vmatpush3.bf16.msra.mxu0 %v2331_v7 }
 0x1bd   :  { %2097 = vmatprep.subr.bf16.mxu0 %v2441_v6 }
 0x1c0   :  { %2098 = vmatpush3.bf16.msra.mxu0 %v2335_v8 }
 0x1c1   :  { %2099 = vmatprep.subr.bf16.mxu0 %v2441_v6 }
 0x1c4   :  { %2100 = vmatpush3.bf16.msra.mxu0 %v2339_v9 }
 0x1c5   :  { %2101 = vmatprep.subr.bf16.mxu0 %v2441_v6 }
 0x1c8   :  { %2102 = vmatpush3.bf16.msra.mxu0 %v2343_v12 }
 0x1c9   :  { %2103 = vmatprep.subr.bf16.mxu0 %v2441_v6 }
 0x1cc   :  { %2104 = vmatpush3.bf16.msra.mxu0 %v2347_v15 }
 0x1cd   :  { %2129 = vmatprep.subr.bf16.mxu0 %v2441_v6 }
 0x282   :  { %v482_v17 = vpop.f32.mrb[4].mxu0 }
 0x283   :  { %v489_v18 = vmul.f32 %v482_v17, %v2599_v37  ;;  %v2087_v20 = vpop.f32.mrb[5].mxu0 }
 0x284   :  { %v485_v21 = vpop.f32.mrb[6].mxu0 }
 0x285   :  { %v490_v22 = vmul.f32 %v485_v21, %v2599_v37  ;;  %v2088_v23 = vpop.f32.mrb[7].mxu0  ;;  %v495_v24 = vadd.f32 %v494_v19, %v489_v18  ;;  %v2349_v37 = vld [vmem:[%s3080_s7] sm:$0xff]  }
 0x287   :  { %v496_v25 = vadd.f32 %v494_v19, %v490_v22 }
 0x289   :  { %v497_v26 = vpack.c.bf16 %v496_v25, %v495_v24 }
 0x28b   :  { %691 = vmatmul.mubr.bf16.vlgmr.msra.gmra.mrb[4].mxu1 %v497_v26  ;;  %2106 = vmatmul.mubr.bf16.vlgmr.msra.gmra.mrb[8].mxu0 %v497_v26 }
 0x28c   :  { %2125 = vmatprep.mubr.msk.bf16.mxu1 %vm2442_vm0, %v2441_v6  ;;  %2145 = vmatprep.mubr.msk.bf16.mxu0 %vm2442_vm0, %v2441_v6 }
 0x28d   :  { %2110 = vmatpush3.bf16.msra.mxu1 %v2348_v27  ;;  %2130 = vmatpush3.bf16.msra.mxu0 %v2349_v37  ;;  %v790_v27 = vsub.s32 6, %v2588_v31 }
 0x28e   :  { %2111 = vmatprep.subr.bf16.mxu1 %v2441_v6  ;;  %2131 = vmatprep.subr.bf16.mxu0 %v2441_v6 }
 0x291   :  { %2112 = vmatpush3.bf16.msra.mxu1 %v2350_v28  ;;  %2132 = vmatpush3.bf16.msra.mxu0 %v2351_v29 }
 0x292   :  { %2113 = vmatprep.subr.bf16.mxu1 %v2441_v6  ;;  %2133 = vmatprep.subr.bf16.mxu0 %v2441_v6 }
 0x295   :  { %2114 = vmatpush3.bf16.msra.mxu1 %v2352_v30  ;;  %2134 = vmatpush3.bf16.msra.mxu0 %v2353_v32 }
 0x296   :  { %2115 = vmatprep.subr.bf16.mxu1 %v2441_v6  ;;  %2135 = vmatprep.subr.bf16.mxu0 %v2441_v6 }
 0x299   :  { %2116 = vmatpush3.bf16.msra.mxu1 %v2354_v33  ;;  %2136 = vmatpush3.bf16.msra.mxu0 %v2355_v34 }
 0x29a   :  { %2117 = vmatprep.subr.bf16.mxu1 %v2441_v6  ;;  %2137 = vmatprep.subr.bf16.mxu0 %v2441_v6 }
 0x29d   :  { %2118 = vmatpush3.bf16.msra.mxu1 %v2356_v35  ;;  %2138 = vmatpush3.bf16.msra.mxu0 %v2357_v38  ;;  %v796_v35 = vsub.s32 7, %v2588_v31 }
 0x29e   :  { %2119 = vmatprep.subr.bf16.mxu1 %v2441_v6  ;;  %2139 = vmatprep.subr.bf16.mxu0 %v2441_v6 }
 0x2a1   :  { %2120 = vmatpush3.bf16.msra.mxu1 %v2358_v39  ;;  %2140 = vmatpush3.bf16.msra.mxu0 %v2359_v40 }
 0x2a2   :  { %2121 = vmatprep.subr.bf16.mxu1 %v2441_v6  ;;  %2141 = vmatprep.subr.bf16.mxu0 %v2441_v6 }
 0x2a5   :  { %2122 = vmatpush3.bf16.msra.mxu1 %v2360_v41  ;;  %2142 = vmatpush3.bf16.msra.mxu0 %v2361_v42 }
 0x2a6   :  { %2123 = vmatprep.subr.bf16.mxu1 %v2441_v6  ;;  %2143 = vmatprep.subr.bf16.mxu0 %v2441_v6 }
 0x2a9   :  { %2124 = vmatpush3.bf16.msra.mxu1 %v2362_v43  ;;  %2144 = vmatpush3.bf16.msra.mxu0 %v2363_v44 }
 0x2aa   :  { %2149 = vmatprep.subr.bf16.mxu1 %v2441_v6  ;;  %2169 = vmatprep.subr.bf16.mxu0 %v2441_v6 }
 0x35e   :  { %v692_v47 = vpop.f32.mrb[4].mxu1  ;;  %v735_v48 = vpop.f32.mrb[8].mxu0 }
 0x35f   :  { %v748_v49 = vrot.slane %v692_v47, 7  ;;  %v754_v50 = vrot.slane %v735_v48, 1  ;;  %v694_v51 = vpop.f32.mrb[5].mxu1  ;;  %v2107_v52 = vpop.f32.mrb[9].mxu0 }
 0x360   :  { %v746_v53 = vadd.f32 %v745_v46, %v694_v51  ;;  %v696_v54 = vpop.f32.mrb[6].mxu1  ;;  %v738_v55 = vpop.f32.mrb[10].mxu0 }
 0x361   :  { %v750_v56 = vsel %vm324_vm1, %v748_v49, 0.0  ;;  %v749_v57 = vrot.slane %v696_v54, 7  ;;  %v755_v58 = vrot.slane %v738_v55, 1  ;;  %v698_v59 = vpop.f32.mrb[7].mxu1  ;;  %v2108_v60 = vpop.f32.mrb[11].mxu0  ;;  %v756_v63 = vsel %vm334_vm2, %v754_v50, 0.0 }
 0x362   :  { %v752_v61 = vadd.f32 %v750_v56, %v746_v53  ;;  %v747_v62 = vadd.f32 %v745_v46, %v698_v59  ;;  %v2364_v56 = vld [vmem:[%s3080_s7 + $0x80] sm:$0xff]  }
 0x363   :  { %v751_v0 = vsel %vm324_vm1, %v749_v57, 0.0  ;;  %v757_v3 = vsel %vm334_vm2, %v755_v58, 0.0  ;;  %v2365_v57 = vld [vmem:[%s3080_s7 + $0xc0] sm:$0xff]  }
 0x364   :  { %v758_v1 = vadd.f32 %v756_v63, %v752_v61  ;;  %v753_v2 = vadd.f32 %v751_v0, %v747_v62 }
 0x366   :  { %v759_v4 = vadd.f32 %v757_v3, %v753_v2 }
 0x368   :  { %v760_v5 = vadd.f32 %v759_v4, %v758_v1 }
 0x36a   :  { %v761_v7 = vrot.slane %v760_v5, 4 }
 0x36c   :  { %v762_v8 = vadd.f32 %v761_v7, %v760_v5  ;;  %v2366_v5 = vld [vmem:[%s3080_s7 + $0x88] sm:$0xff]  }
 0x36d   :  { %v2367_v7 = vld [vmem:[%s3080_s7 + $0xc8] sm:$0xff]  }
 0x36e   :  { %v763_v9 = vrot.slane %v762_v8, 2 }
 0x370   :  { %v764_v10 = vadd.f32 %v763_v9, %v762_v8 }
 0x372   :  { %v765_v11 = vrot.slane %v764_v10, 1 }
 0x374   :  { %v766_v12 = vadd.f32 %v765_v11, %v764_v10  ;;  %v2368_v11 = vld [vmem:[%s3080_s7 + $0x90] sm:$0xff]  }
 0x376   :  { %v767_v13 = vmul.f32 0.0625, %v766_v12  ;;  %v2369_v12 = vld [vmem:[%s3080_s7 + $0xd0] sm:$0xff]  }
 0x378   :  { %v768_v14 = vsub.f32 %v758_v1, %v767_v13  ;;  %v769_v15 = vsub.f32 %v759_v4, %v767_v13 }
 0x37a   :  { %v770_v16 = vmul.f32 %v768_v14, %v768_v14  ;;  %v771_v17 = vmul.f32 %v769_v15, %v769_v15  ;;  %v2371_v14 = vld [vmem:[%s3080_s7 + $0xd8] sm:$0xff]   ;;  %v2372_v15 = vld [vmem:[%s3080_s7 + $0xa0] sm:$0xff]  }
 0x37c   :  { %v772_v18 = vadd.f32 %v771_v17, %v770_v16  ;;  %v2373_v16 = vld [vmem:[%s3080_s7 + $0xe0] sm:$0xff]   ;;  %v2374_v17 = vld [vmem:[%s3080_s7 + $0xa8] sm:$0xff]  }
 0x37e   :  { %v773_v19 = vrot.slane %v772_v18, 4 }
 0x380   :  { %v774_v20 = vadd.f32 %v773_v19, %v772_v18  ;;  %v2375_v18 = vld [vmem:[%s3080_s7 + $0xe8] sm:$0xff]   ;;  %v2376_v19 = vld [vmem:[%s3080_s7 + $0xb0] sm:$0xff]  }
 0x382   :  { %v775_v21 = vrot.slane %v774_v20, 2 }
 0x384   :  { %v776_v22 = vadd.f32 %v775_v21, %v774_v20  ;;  %v2377_v20 = vld [vmem:[%s3080_s7 + $0xf0] sm:$0xff]   ;;  %v2378_v21 = vld [vmem:[%s3080_s7 + $0xb8] sm:$0xff]  }
 0x386   :  { %v777_v23 = vrot.slane %v776_v22, 1 }
 0x388   :  { %v778_v24 = vadd.f32 %v777_v23, %v776_v22  ;;  %v2379_v22 = vld [vmem:[%s3080_s7 + $0xf8] sm:$0xff]   ;;  %v2380_v23 = vld [vmem:[%s3080_s7 + $0x100] sm:$0xff]  }
 0x38a   :  { %v779_v25 = vmul.f32 0.0625, %v778_v24  ;;  %v2381_v24 = vld [vmem:[%s3080_s7 + $0x140] sm:$0xff]  }
 0x38c   :  { %v780_v26 = vadd.f32 1e-05, %v779_v25 }
 0x38e   :  { %2414 = vrsqrt.f32 %v780_v26 }
 0x398   :  { %v2415_v37 = vpop.eup %2414 }
 0x399   :  { %v782_v28 = vmul.f32 %v2415_v37, %v2597_v36  ;;  %v2383_v37 = vld [vmem:[%s3080_s7 + $0x148] sm:$0xff]  }
 0x39b   :  { %v783_v29 = vmul.f32 %v782_v28, %v767_v13  ;;  %v791_v30 = vrot.slane %v782_v28, %v790_v27  ;;  %v2370_v13 = vld [vmem:[%s3080_s7 + $0x98] sm:$0xff]   ;;  %v2382_v27 = vld [vmem:[%s3080_s7 + $0x108] sm:$0xff]   ;;  %v2384_v28 = vld [vmem:[%s3080_s7 + $0x110] sm:$0xff]  }
 0x39d   :  { %v785_v32 = vrot.slane %v783_v29, 7  ;;  %v792_v33 = vmul.f32 %v791_v30, %v758_v1  ;;  %v793_v34 = vmul.f32 %v791_v30, %v759_v4  ;;  %v2385_v29 = vld [vmem:[%s3080_s7 + $0x150] sm:$0xff]   ;;  %v2386_v30 = vld [vmem:[%s3080_s7 + $0x118] sm:$0xff]  }
 0x39f   :  { %v787_v38 = vsub.f32 %v2597_v36, %v785_v32  ;;  %v2387_v32 = vld [vmem:[%s3080_s7 + $0x158] sm:$0xff]  }
 0x3a1   :  { %v797_v39 = vrot.slane %v787_v38, %v796_v35  ;;  %v2390_v35 = vld [vmem:[%s3080_s7 + $0x128] sm:$0xff]  }
 0x3a2   :  { %v2391_v38 = vld [vmem:[%s3080_s7 + $0x168] sm:$0xff]  }
 0x3a3   :  { %v798_v40 = vadd.f32 %v797_v39, %v792_v33  ;;  %v799_v41 = vadd.f32 %v797_v39, %v793_v34  ;;  %v2388_v33 = vld [vmem:[%s3080_s7 + $0x120] sm:$0xff]   ;;  %v2392_v39 = vld [vmem:[%s3080_s7 + $0x130] sm:$0xff]  }
 0x3a4   :  { %v2389_v34 = vld [vmem:[%s3080_s7 + $0x160] sm:$0xff]  }
 0x3a5   :  { %v800_v42 = vmax.f32 %v798_v40, 0.0  ;;  %v801_v43 = vmax.f32 %v799_v41, 0.0  ;;  %v2393_v40 = vld [vmem:[%s3080_s7 + $0x170] sm:$0xff]   ;;  %v2394_v41 = vld [vmem:[%s3080_s7 + $0x138] sm:$0xff]  }
 0x3a7   :  { %v802_v44 = vpack.c.bf16 %v800_v42, %v800_v42  ;;  %v803_v45 = vpack.c.bf16 %v801_v43, %v801_v43  ;;  %v2395_v42 = vld [vmem:[%s3080_s7 + $0x178] sm:$0xff]   ;;  %v2396_v43 = vld [vmem:[%s3080_s7 + $0x180] sm:$0xff]  }
 0x3a9   :  { %v839_v46 = vunpack.c.l.b16 %v802_v44  ;;  %v840_v47 = vunpack.c.l.b16 %v803_v45  ;;  %v2397_v44 = vld [vmem:[%s3080_s7 + $0x1c0] sm:$0xff]  }
 0x3ab   :  { %v841_v48 = vrot.slane %v839_v46, 1  ;;  %v934_v49 = vrot.slane %v840_v47, 7  ;;  %v1043_v50 = vrot.slane %v839_v46, 2  ;;  %v1044_v51 = vrot.slane %v840_v47, 1 }
 0x3ac   :  { %v1154_v52 = vrot.slane %v839_v46, 3  ;;  %v1155_v53 = vrot.slane %v840_v47, 2  ;;  %v1265_v54 = vrot.slane %v839_v46, 4  ;;  %v1266_v31 = vrot.slane %v840_v47, 3 }
 0x3ad   :  { %v843_v36 = vsel %vm842_vm3, %v840_v47, %v841_v48  ;;  %v935_v55 = vsel %vm842_vm3, %v934_v49, %v839_v46  ;;  %v2833_v58 = vsel %vm842_vm3, %v1044_v51, %v1043_v50  ;;  %v1376_v59 = vrot.slane %v839_v46, 5  ;;  %v2399_v48 = vld [vmem:[%s3080_s7 + $0x1c8] sm:$0xff]   ;;  %v2400_v49 = vld [vmem:[%s3080_s7 + $0x190] sm:$0xff]   ;;  %v2402_v51 = vld [vmem:[%s3080_s7 + $0x198] sm:$0xff]  }
 0x3ae   :  { %v844_v60 = vpack.c.b16 %v843_v36, %v843_v36  ;;  %v936_v61 = vpack.c.b16 %v935_v55, %v935_v55  ;;  %v2836_v62 = vsel %vm842_vm3, %v1155_v53, %v1154_v52  ;;  %v2839_v63 = vsel %vm842_vm3, %v1266_v31, %v1265_v54  ;;  %v2401_v50 = vld [vmem:[%s3080_s7 + $0x1d0] sm:$0xff]   ;;  %v2403_v52 = vld [vmem:[%s3080_s7 + $0x1d8] sm:$0xff]   ;;  %v2404_v53 = vld [vmem:[%s3080_s7 + $0x1a0] sm:$0xff]  }
 0x3af   :  { %v1377_v0 = vrot.slane %v840_v47, 4  ;;  %v1487_v1 = vrot.slane %v839_v46, 6  ;;  %v1488_v2 = vrot.slane %v840_v47, 5  ;;  %v1598_v3 = vrot.slane %v839_v46, 7  ;;  %v2405_v54 = vld [vmem:[%s3080_s7 + $0x1e0] sm:$0xff]   ;;  %v2406_v31 = vld [vmem:[%s3080_s7 + $0x1a8] sm:$0xff]  }
 0x3b0   :  { %2126 = vmatmul.mubr.bf16.vlgmr.msra.gmra.mrb[8].mxu1 %v844_v60  ;;  %2146 = vmatmul.mubr.bf16.vlgmr.msra.gmra.mrb[12].mxu0 %v936_v61  ;;  %v1599_v4 = vrot.slane %v840_v47, 6  ;;  %v1046_v25 = vpack.c.b16 %v2833_v58, %v2833_v58  ;;  %v1157_v26 = vpack.c.b16 %v2836_v62, %v2836_v62  ;;  %v1268_v45 = vpack.c.b16 %v2839_v63, %v2839_v63  ;;  %v2398_v47 = vld [vmem:[%s3080_s7 + $0x188] sm:$0xff]   ;;  %v2408_v55 = vld [vmem:[%s3080_s7 + $0x1b0] sm:$0xff]   ;;  %v2411_v58 = vld [vmem:[%s3080_s7 + $0x1f8] sm:$0xff]  }
 0x3b1   :  { %2150 = vmatpush3.bf16.msra.mxu1 %v2364_v56  ;;  %2170 = vmatpush3.bf16.msra.mxu0 %v2365_v57  ;;  %v2848_v8 = vsel %vm842_vm3, %v1377_v0, %v1376_v59  ;;  %v2853_v9 = vsel %vm842_vm3, %v1488_v2, %v1487_v1  ;;  %v2407_v36 = vld [vmem:[%s3080_s7 + $0x1e8] sm:$0xff]   ;;  %v2409_v56 = vld [vmem:[%s3080_s7 + $0x1f0] sm:$0xff]   ;;  %v2410_v57 = vld [vmem:[%s3080_s7 + $0x1b8] sm:$0xff]  }
 0x3b2   :  { %2151 = vmatprep.subr.bf16.mxu1 %v2441_v6  ;;  %2171 = vmatprep.subr.bf16.mxu0 %v2441_v6  ;;  %v2856_v10 = vsel %vm842_vm3, %v1599_v4, %v1598_v3  ;;  %v1379_v46 = vpack.c.b16 %v2848_v8, %v2848_v8  ;;  %v1490_v59 = vpack.c.b16 %v2853_v9, %v2853_v9 }
 0x3b3   :  { %2165 = vmatprep.mubr.msk.bf16.mxu1 %vm2442_vm0, %v2441_v6  ;;  %2185 = vmatprep.mubr.msk.bf16.mxu0 %vm2442_vm0, %v2441_v6  ;;  %v1601_v60 = vpack.c.b16 %v2856_v10, %v2856_v10 }
 0x3b5   :  { %2152 = vmatpush3.bf16.msra.mxu1 %v2366_v5  ;;  %2172 = vmatpush3.bf16.msra.mxu0 %v2367_v7 }
 0x3b6   :  { %2153 = vmatprep.subr.bf16.mxu1 %v2441_v6  ;;  %2173 = vmatprep.subr.bf16.mxu0 %v2441_v6 }
 0x3b9   :  { %2154 = vmatpush3.bf16.msra.mxu1 %v2368_v11  ;;  %2174 = vmatpush3.bf16.msra.mxu0 %v2369_v12 }
 0x3ba   :  { %2155 = vmatprep.subr.bf16.mxu1 %v2441_v6  ;;  %2175 = vmatprep.subr.bf16.mxu0 %v2441_v6 }
 0x3bd   :  { %2156 = vmatpush3.bf16.msra.mxu1 %v2370_v13  ;;  %2176 = vmatpush3.bf16.msra.mxu0 %v2371_v14 }
 0x3be   :  { %2157 = vmatprep.subr.bf16.mxu1 %v2441_v6  ;;  %2177 = vmatprep.subr.bf16.mxu0 %v2441_v6 }
 0x3c1   :  { %2158 = vmatpush3.bf16.msra.mxu1 %v2372_v15  ;;  %2178 = vmatpush3.bf16.msra.mxu0 %v2373_v16 }
 0x3c2   :  { %2159 = vmatprep.subr.bf16.mxu1 %v2441_v6  ;;  %2179 = vmatprep.subr.bf16.mxu0 %v2441_v6 }
 0x3c5   :  { %2160 = vmatpush3.bf16.msra.mxu1 %v2374_v17  ;;  %2180 = vmatpush3.bf16.msra.mxu0 %v2375_v18 }
 0x3c6   :  { %2161 = vmatprep.subr.bf16.mxu1 %v2441_v6  ;;  %2181 = vmatprep.subr.bf16.mxu0 %v2441_v6 }
 0x3c9   :  { %2162 = vmatpush3.bf16.msra.mxu1 %v2376_v19  ;;  %2182 = vmatpush3.bf16.msra.mxu0 %v2377_v20 }
 0x3ca   :  { %2163 = vmatprep.subr.bf16.mxu1 %v2441_v6  ;;  %2183 = vmatprep.subr.bf16.mxu0 %v2441_v6 }
 0x3cd   :  { %2164 = vmatpush3.bf16.msra.mxu1 %v2378_v21  ;;  %2184 = vmatpush3.bf16.msra.mxu0 %v2379_v22 }
 0x3ce   :  { %2189 = vmatprep.subr.bf16.mxu1 %v2441_v6  ;;  %2209 = vmatprep.subr.bf16.mxu0 %v2441_v6 }
 0x3d0   :  { %2166 = vmatmul.mubr.bf16.vlgmr.msra.gmra.mrb[12].mxu1 %v1046_v25  ;;  %2186 = vmatmul.mubr.bf16.vlgmr.msra.gmra.mrb[16].mxu0 %v1157_v26 }
 0x3d1   :  { %2190 = vmatpush3.bf16.msra.mxu1 %v2380_v23  ;;  %2210 = vmatpush3.bf16.msra.mxu0 %v2381_v24 }
 0x3d2   :  { %2191 = vmatprep.subr.bf16.mxu1 %v2441_v6  ;;  %2211 = vmatprep.subr.bf16.mxu0 %v2441_v6 }
 0x3d3   :  { %2205 = vmatprep.mubr.msk.bf16.mxu1 %vm2442_vm0, %v2441_v6  ;;  %2225 = vmatprep.mubr.msk.bf16.mxu0 %vm2442_vm0, %v2441_v6 }
 0x3d5   :  { %2192 = vmatpush3.bf16.msra.mxu1 %v2382_v27  ;;  %2212 = vmatpush3.bf16.msra.mxu0 %v2383_v37 }
 0x3d6   :  { %2193 = vmatprep.subr.bf16.mxu1 %v2441_v6  ;;  %2213 = vmatprep.subr.bf16.mxu0 %v2441_v6 }
 0x3d9   :  { %2194 = vmatpush3.bf16.msra.mxu1 %v2384_v28  ;;  %2214 = vmatpush3.bf16.msra.mxu0 %v2385_v29 }
 0x3da   :  { %2195 = vmatprep.subr.bf16.mxu1 %v2441_v6  ;;  %2215 = vmatprep.subr.bf16.mxu0 %v2441_v6 }
 0x3dd   :  { %2196 = vmatpush3.bf16.msra.mxu1 %v2386_v30  ;;  %2216 = vmatpush3.bf16.msra.mxu0 %v2387_v32  ;;  %v1949_v30 = vld [vmem:[%s3081_s8] ss:$0 sm:$0xff] }
 0x3de   :  { %2197 = vmatprep.subr.bf16.mxu1 %v2441_v6  ;;  %2217 = vmatprep.subr.bf16.mxu0 %v2441_v6 }
 0x3e1   :  { %2198 = vmatpush3.bf16.msra.mxu1 %v2388_v33  ;;  %2218 = vmatpush3.bf16.msra.mxu0 %v2389_v34 }
 0x3e2   :  { %2199 = vmatprep.subr.bf16.mxu1 %v2441_v6  ;;  %2219 = vmatprep.subr.bf16.mxu0 %v2441_v6 }
 0x3e5   :  { %2200 = vmatpush3.bf16.msra.mxu1 %v2390_v35  ;;  %2220 = vmatpush3.bf16.msra.mxu0 %v2391_v38 }
 0x3e6   :  { %2201 = vmatprep.subr.bf16.mxu1 %v2441_v6  ;;  %2221 = vmatprep.subr.bf16.mxu0 %v2441_v6 }
 0x3e9   :  { %2202 = vmatpush3.bf16.msra.mxu1 %v2392_v39  ;;  %2222 = vmatpush3.bf16.msra.mxu0 %v2393_v40 }
 0x3ea   :  { %2203 = vmatprep.subr.bf16.mxu1 %v2441_v6  ;;  %2223 = vmatprep.subr.bf16.mxu0 %v2441_v6 }
 0x3ed   :  { %2204 = vmatpush3.bf16.msra.mxu1 %v2394_v41  ;;  %2224 = vmatpush3.bf16.msra.mxu0 %v2395_v42 }
 0x3ee   :  { %2229 = vmatprep.subr.bf16.mxu1 %v2441_v6  ;;  %2249 = vmatprep.subr.bf16.mxu0 %v2441_v6 }
 0x3f0   :  { %2206 = vmatmul.mubr.bf16.vlgmr.msra.gmra.mrb[16].mxu1 %v1268_v45  ;;  %2226 = vmatmul.mubr.bf16.vlgmr.msra.gmra.mrb[20].mxu0 %v1379_v46 }
 0x3f1   :  { %2230 = vmatpush3.bf16.msra.mxu1 %v2396_v43  ;;  %2250 = vmatpush3.bf16.msra.mxu0 %v2397_v44 }
 0x3f2   :  { %2231 = vmatprep.subr.bf16.mxu1 %v2441_v6  ;;  %2251 = vmatprep.subr.bf16.mxu0 %v2441_v6 }
 0x3f3   :  { %2245 = vmatprep.mubr.msk.bf16.mxu1 %vm2442_vm0, %v2441_v6  ;;  %2265 = vmatprep.mubr.msk.bf16.mxu0 %vm2442_vm0, %v2441_v6 }
 0x3f5   :  { %2232 = vmatpush3.bf16.msra.mxu1 %v2398_v47  ;;  %2252 = vmatpush3.bf16.msra.mxu0 %v2399_v48 }
 0x3f6   :  { %2233 = vmatprep.subr.bf16.mxu1 %v2441_v6  ;;  %2253 = vmatprep.subr.bf16.mxu0 %v2441_v6 }
 0x3f9   :  { %2234 = vmatpush3.bf16.msra.mxu1 %v2400_v49  ;;  %2254 = vmatpush3.bf16.msra.mxu0 %v2401_v50 }
 0x3fa   :  { %2235 = vmatprep.subr.bf16.mxu1 %v2441_v6  ;;  %2255 = vmatprep.subr.bf16.mxu0 %v2441_v6 }
 0x3fd   :  { %2236 = vmatpush3.bf16.msra.mxu1 %v2402_v51  ;;  %2256 = vmatpush3.bf16.msra.mxu0 %v2403_v52 }
 0x3fe   :  { %2237 = vmatprep.subr.bf16.mxu1 %v2441_v6  ;;  %2257 = vmatprep.subr.bf16.mxu0 %v2441_v6 }
 0x401   :  { %2238 = vmatpush3.bf16.msra.mxu1 %v2404_v53  ;;  %2258 = vmatpush3.bf16.msra.mxu0 %v2405_v54 }
 0x402   :  { %2239 = vmatprep.subr.bf16.mxu1 %v2441_v6  ;;  %2259 = vmatprep.subr.bf16.mxu0 %v2441_v6 }
 0x405   :  { %2240 = vmatpush3.bf16.msra.mxu1 %v2406_v31  ;;  %2260 = vmatpush3.bf16.msra.mxu0 %v2407_v36 }
 0x406   :  { %2241 = vmatprep.subr.bf16.mxu1 %v2441_v6  ;;  %2261 = vmatprep.subr.bf16.mxu0 %v2441_v6 }
 0x409   :  { %2242 = vmatpush3.bf16.msra.mxu1 %v2408_v55  ;;  %2262 = vmatpush3.bf16.msra.mxu0 %v2409_v56 }
 0x40a   :  { %2243 = vmatprep.subr.bf16.mxu1 %v2441_v6  ;;  %2263 = vmatprep.subr.bf16.mxu0 %v2441_v6 }
 0x40d   :  { %2244 = vmatpush3.bf16.msra.mxu1 %v2410_v57  ;;  %2264 = vmatpush3.bf16.msra.mxu0 %v2411_v58 }
 0x410   :  { %2246 = vmatmul.mubr.bf16.vlgmr.msra.gmra.mrb[20].mxu1 %v1490_v59  ;;  %2266 = vmatmul.mubr.bf16.vlgmr.msra.gmra.mrb[24].mxu0 %v1601_v60 }
 0x483   :  { %v928_v61 = vpop.f32.mrb[8].mxu1  ;;  %v1020_v62 = vpop.f32.mrb[12].mxu0 }
 0x484   :  { %v1021_v63 = vadd.f32 %v1020_v62, %v928_v61  ;;  %v2127_v0 = vpop.f32.mrb[9].mxu1  ;;  %v2147_v1 = vpop.f32.mrb[13].mxu0 }
 0x485   :  { %v931_v2 = vpop.f32.mrb[10].mxu1  ;;  %v1023_v3 = vpop.f32.mrb[14].mxu0 }
 0x486   :  { %v2128_v4 = vpop.f32.mrb[11].mxu1  ;;  %v2148_v5 = vpop.f32.mrb[15].mxu0 }
 0x4a3   :  { %v1130_v6 = vpop.f32.mrb[12].mxu1  ;;  %v1241_v7 = vpop.f32.mrb[16].mxu0 }
 0x4a4   :  { %v1136_v8 = vadd.f32 %v1130_v6, %v1021_v63  ;;  %v2167_v11 = vpop.f32.mrb[13].mxu1  ;;  %v2187_v12 = vpop.f32.mrb[17].mxu0 }
 0x4a5   :  { %v1133_v9 = vpop.f32.mrb[14].mxu1  ;;  %v1244_v13 = vpop.f32.mrb[18].mxu0 }
 0x4a6   :  { %v1247_v14 = vadd.f32 %v1241_v7, %v1136_v8  ;;  %v2168_v10 = vpop.f32.mrb[15].mxu1  ;;  %v2188_v15 = vpop.f32.mrb[19].mxu0 }
 0x4c3   :  { %v1352_v16 = vpop.f32.mrb[16].mxu1  ;;  %v1463_v17 = vpop.f32.mrb[20].mxu0 }
 0x4c4   :  { %v1358_v18 = vadd.f32 %v1352_v16, %v1247_v14  ;;  %v2207_v19 = vpop.f32.mrb[17].mxu1  ;;  %v2227_v20 = vpop.f32.mrb[21].mxu0 }
 0x4c5   :  { %v1355_v21 = vpop.f32.mrb[18].mxu1  ;;  %v1466_v22 = vpop.f32.mrb[22].mxu0 }
 0x4c6   :  { %v1469_v23 = vadd.f32 %v1463_v17, %v1358_v18  ;;  %v2208_v24 = vpop.f32.mrb[19].mxu1  ;;  %v2228_v25 = vpop.f32.mrb[23].mxu0 }
 0x4e3   :  { %v1574_v26 = vpop.f32.mrb[20].mxu1  ;;  %v1685_v27 = vpop.f32.mrb[24].mxu0 }
 0x4e4   :  { %v1580_v37 = vadd.f32 %v1574_v26, %v1469_v23  ;;  %v2247_v28 = vpop.f32.mrb[21].mxu1  ;;  %v2267_v29 = vpop.f32.mrb[25].mxu0 }
 0x4e5   :  { %v1577_v32 = vpop.f32.mrb[22].mxu1  ;;  %v1688_v33 = vpop.f32.mrb[26].mxu0 }
 0x4e6   :  { %v1691_v34 = vadd.f32 %v1685_v27, %v1580_v37  ;;  %v2248_v35 = vpop.f32.mrb[23].mxu1  ;;  %v2268_v38 = vpop.f32.mrb[27].mxu0 }
 0x4e8   :  { %v1699_v39 = vadd.f32 %v1949_v30, %v1691_v34 }
 0x4ea   :  { %1701 = vst.msk [vmem:[#allocation3] sm:$0x3] %vm1700_vm4, %v1699_v39 }
 0x4eb   :  { %2427 = shalt.err (!%p2424_p4)
}
 0x4ec   :  { %s2428_s20 = scalar_lea.hbm %s3082_s9, 32 }
 0x4ed   :  { %p2429_p5 = scmp.ne.s32.totalorder %s3082_s9, %s2428_s20  ;;  %p2432_p6 = scmp.lt.u32.totalorder %s2428_s20, %s3082_s9 }
 0x4ef   :  { %p2434_p7 = pnand %p2432_p6, %p2429_p5 }
 0x4f1   :  { %2437 = shalt.err (!%p2434_p7)
}
 0x4f2   :  { %1711 = dma.vmem_to_hbm [thread:$0]  %s1709_s2, 32, %s3082_s9, [#allocation4]  }
 0x4f3   :  { %2438 = dma.done.wait [#allocation4], 32  }
 0x4f4   :  { %2439 = vsyncadd [#allocation4], 4294967264 }
 0x4f5   :  { %1715 = vsyncpa [#allocation4], 1 }

</bundles_post_ra>
